<compile_context>
chip_gen: v7x
topology: tpu7x:2x2x1
jax: 0.10.0
libtpu: 0.0.40
codegen_flags: <defaults>
</compile_context>

<pallas_src>
import numpy as np

import jax
import jax.numpy as jnp
from jax import lax
from jax.experimental import pallas as pl
from jax.experimental.pallas import tpu as pltpu

LANE = 128          # all kernel outputs padded to 128 lanes -> lane-dense stores
M_TILE = 512        # row tile for the fused conv kernels (multiple of 8)
B_TILE = 512        # batch tile for the fused FC head (multiple of 8)


def _round_up(x, m):
    return (x + m - 1) // m * m


# ---------------------------------------------------------------------------
# Pallas kernels
# ---------------------------------------------------------------------------
def _conv_pool_relu_kernel(p_ref, w_ref, b_ref, o_ref):
    """relu(maxpool2x2(conv) + bias) as max over 4 quadrant im2col matmuls.

    p_ref : (4, MT, K)  im2col patches, one slab per 2x2-pool quadrant
    w_ref : (K, 128)    conv weights (output channels zero-padded to 128)
    b_ref : (1, 128)    bias (zero-padded)
    o_ref : (MT, 128)   pooled + relu'd output, rows = (batch, i_pool, j_pool)
    """
    w = w_ref[...]
    y0 = jnp.dot(p_ref[0], w, preferred_element_type=jnp.float32)
    y1 = jnp.dot(p_ref[1], w, preferred_element_type=jnp.float32)
    y2 = jnp.dot(p_ref[2], w, preferred_element_type=jnp.float32)
    y3 = jnp.dot(p_ref[3], w, preferred_element_type=jnp.float32)
    y = jnp.maximum(jnp.maximum(y0, y1), jnp.maximum(y2, y3))
    o_ref[...] = jnp.maximum(y + b_ref[...], 0.0).astype(o_ref.dtype)


def _fc_head_kernel(x_ref, w1_ref, b1_ref, w2_ref, b2_ref, w3_ref, b3_ref, o_ref):
    """fc1 -> relu -> fc2 -> relu -> fc3 -> log_softmax fused in one kernel."""
    h = jnp.dot(x_ref[...], w1_ref[...], preferred_element_type=jnp.float32)
    h = jnp.maximum(h + b1_ref[...], 0.0)
    h = jnp.dot(h, w2_ref[...], preferred_element_type=jnp.float32)
    h = jnp.maximum(h + b2_ref[...], 0.0)
    y = jnp.dot(h, w3_ref[...], preferred_element_type=jnp.float32) + b3_ref[...]
    # Padded logit lanes carry a -1e30 bias: they never win the max and their
    # exp underflows to 0, so this is an exact log_softmax over the 2 classes.
    m = jnp.max(y, axis=-1, keepdims=True)
    e = jnp.exp(y - m)
    s = jnp.sum(e, axis=-1, keepdims=True)
    o_ref[...] = (y - m - jnp.log(s)).astype(o_ref.dtype)


# ---------------------------------------------------------------------------
# Pallas wrappers
# ---------------------------------------------------------------------------
def conv_pool_relu(patches, w, b):
    """patches: (4, M, K) f32; w: (K, 128); b: (1, 128) -> (Mpad, 128)."""
    q, m, k = patches.shape
    n = w.shape[1]
    mt = min(M_TILE, _round_up(m, 8))
    m_pad = _round_up(m, mt)
    if m_pad != m:
        patches = jnp.pad(patches, ((0, 0), (0, m_pad - m), (0, 0)))
    return pl.pallas_call(
        _conv_pool_relu_kernel,
        out_shape=jax.ShapeDtypeStruct((m_pad, n), jnp.float32),
        grid=(m_pad // mt,),
        in_specs=[
            pl.BlockSpec((q, mt, k), lambda i: (0, i, 0)),
            pl.BlockSpec((k, n), lambda i: (0, 0)),
            pl.BlockSpec((1, n), lambda i: (0, 0)),
        ],
        out_specs=pl.BlockSpec((mt, n), lambda i: (i, 0)),
        compiler_params=pltpu.CompilerParams(dimension_semantics=("parallel",)),
    )(patches, w, b)


def fc_head(x, pp):
    """x: (B, 256) f32 -> (Bpad, 128) log-softmax logits (cols 0..1 valid)."""
    b, k = x.shape
    n = pp["f1_w"].shape[1]
    bt = min(B_TILE, _round_up(b, 8))
    b_pad = _round_up(b, bt)
    if b_pad != b:
        x = jnp.pad(x, ((0, b_pad - b), (0, 0)))
    return pl.pallas_call(
        _fc_head_kernel,
        out_shape=jax.ShapeDtypeStruct((b_pad, n), jnp.float32),
        grid=(b_pad // bt,),
        in_specs=[
            pl.BlockSpec((bt, k), lambda i: (i, 0)),
            pl.BlockSpec(pp["f1_w"].shape, lambda i: (0, 0)),
            pl.BlockSpec(pp["f1_b"].shape, lambda i: (0, 0)),
            pl.BlockSpec(pp["f2_w"].shape, lambda i: (0, 0)),
            pl.BlockSpec(pp["f2_b"].shape, lambda i: (0, 0)),
            pl.BlockSpec(pp["f3_w"].shape, lambda i: (0, 0)),
            pl.BlockSpec(pp["f3_b"].shape, lambda i: (0, 0)),
        ],
        out_specs=pl.BlockSpec((bt, n), lambda i: (i, 0)),
        compiler_params=pltpu.CompilerParams(dimension_semantics=("parallel",)),
    )(x, pp["f1_w"], pp["f1_b"], pp["f2_w"], pp["f2_b"], pp["f3_w"], pp["f3_b"])


# ---------------------------------------------------------------------------
# XLA-side layout plumbing (patch extraction for the fused conv+pool kernels)
# ---------------------------------------------------------------------------
def _im2col_pool_quadrants(xh, k=5):
    """Quadrant-grouped im2col for fused conv(5x5, valid) + maxpool(2).

    xh: (B, H, W, C) NHWC.  Returns (4, B*Hp*Wp, C*k*k) with column order
    (c, di, dj) matching torch's (O, C, kh, kw) weight flattening, plus the
    pooled spatial shape (Hp, Wp).
    """
    bsz, h, w, c = xh.shape
    hp, wp = (h - k + 1) // 2, (w - k + 1) // 2
    quads = []
    for a in (0, 1):
        for e in (0, 1):
            cols = [
                xh[:, a + di:a + di + 2 * hp:2, e + dj:e + dj + 2 * wp:2, :]
                for di in range(k) for dj in range(k)
            ]
            pq = jnp.stack(cols, axis=-1)                      # (B, hp, wp, C, k*k)
            quads.append(pq.reshape(bsz * hp * wp, c * k * k))
    return jnp.stack(quads, axis=0), (hp, wp)


# ---------------------------------------------------------------------------
# Parameters (torch layout) and one-time kernel-layout preparation
# ---------------------------------------------------------------------------
def init_params(key):
    ks = jax.random.split(key, 10)
    n = lambda kk, shape, scale: scale * jax.random.normal(kk, shape, jnp.float32)
    return {
        "conv1_w": n(ks[0], (6, 1, 5, 5), 0.2),
        "conv1_b": n(ks[1], (6,), 0.1),
        "conv2_w": n(ks[2], (16, 6, 5, 5), 0.08),
        "conv2_b": n(ks[3], (16,), 0.1),
        "fc1_w":   n(ks[4], (120, 256), 0.06),   # torch Linear: [out, in]
        "fc1_b":   n(ks[5], (120,), 0.05),
        "fc2_w":   n(ks[6], (64, 120), 0.09),
        "fc2_b":   n(ks[7], (64,), 0.05),
        "fc3_w":   n(ks[8], (2, 64), 0.12),
        "fc3_b":   n(ks[9], (2,), 0.05),
    }


def prepare_params(params):
    """One-time re-layout: transpose to (in,out), pad to 128 lanes, permute fc1."""
    f32 = jnp.float32

    def pad_to(a, shape):
        return jnp.pad(a, [(0, s - d) for d, s in zip(a.shape, shape)])

    c1_w = pad_to(params["conv1_w"].reshape(6, 25).T.astype(f32), (25, LANE))
    c1_b = pad_to(params["conv1_b"].reshape(1, 6).astype(f32), (1, LANE))
    c2_w = pad_to(params["conv2_w"].reshape(16, 150).T.astype(f32), (150, LANE))
    c2_b = pad_to(params["conv2_b"].reshape(1, 16).astype(f32), (1, LANE))

    # fc1: reorder input columns from torch's NCHW flatten (c,h,w) to our NHWC
    # flatten (h,w,c), then transpose to (in, out) and pad out-dim to 128.
    perm = np.arange(256).reshape(16, 4, 4).transpose(1, 2, 0).reshape(-1)
    f1_w = pad_to(params["fc1_w"][:, perm].T.astype(f32), (256, LANE))
    f1_b = pad_to(params["fc1_b"].reshape(1, 120).astype(f32), (1, LANE))
    f2_w = pad_to(params["fc2_w"].T.astype(f32), (LANE, LANE))
    f2_b = pad_to(params["fc2_b"].reshape(1, 64).astype(f32), (1, LANE))
    f3_w = pad_to(params["fc3_w"].T.astype(f32), (LANE, LANE))
    # padded logit lanes get a huge negative bias so they vanish in log_softmax
    f3_b = jnp.full((1, LANE), -1e30, f32).at[0, :2].set(params["fc3_b"].astype(f32))

    return dict(c1_w=c1_w, c1_b=c1_b, c2_w=c2_w, c2_b=c2_b,
                f1_w=f1_w, f1_b=f1_b, f2_w=f2_w, f2_b=f2_b,
                f3_w=f3_w, f3_b=f3_b)


# ---------------------------------------------------------------------------
# Network forward (3 pallas_calls)
# ---------------------------------------------------------------------------
def net_forward(pp, x):
    """Forward pass of Net. Dropout2d / F.dropout are identity (eval mode)."""
    bsz = x.shape[0]
    x = x.astype(jnp.float32)
    xh = x.reshape(bsz, 28, 28, 1)                     # C=1: NCHW -> NHWC is a reshape

    # conv1(5x5) + maxpool(2) + relu, fused in one Pallas kernel
    p1, (h1p, w1p) = _im2col_pool_quadrants(xh)        # (4, B*144, 25)
    y1 = conv_pool_relu(p1, pp["c1_w"], pp["c1_b"])    # (B*144 rows, 128 lanes)
    f1 = y1[: bsz * h1p * w1p, :6].reshape(bsz, h1p, w1p, 6)   # NHWC (B,12,12,6)

    # conv2(5x5) + Dropout2d(identity) + maxpool(2) + relu, fused
    p2, (h2p, w2p) = _im2col_pool_quadrants(f1)        # (4, B*16, 150)
    y2 = conv_pool_relu(p2, pp["c2_w"], pp["c2_b"])    # (B*16 rows, 128 lanes)
    xf = y2[: bsz * h2p * w2p, :16].reshape(bsz, 256)  # flatten in (h, w, c) order

    # fc1 -> relu -> fc2 -> relu -> fc3 -> log_softmax, fused (fc1 columns were
    # pre-permuted so the NHWC flatten matches torch's x.view(-1, 256)).
    out = fc_head(xf, pp)                              # (Bpad, 128)
    return out[:bsz, :2]


# ---------------------------------------------------------------------------
# Pure-JAX reference (for a correctness spot-check)
# ---------------------------------------------------------------------------
def reference_forward(params, x):
    x = x.astype(jnp.float32)
    hi = lax.Precision.HIGHEST

    def conv(z, w, b):
        y = lax.conv_general_dilated(z, w, (1, 1), "VALID",
                                     dimension_numbers=("NCHW", "OIHW", "NCHW"),
                                     precision=hi)
        return y + b.reshape(1, -1, 1, 1)

    def pool_relu(z):
        y = lax.reduce_window(z, -jnp.inf, lax.max, (1, 1, 2, 2), (1, 1, 2, 2), "VALID")
        return jnp.maximum(y, 0.0)

    x = pool_relu(conv(x, params["conv1_w"], params["conv1_b"]))
    x = pool_relu(conv(x, params["conv2_w"], params["conv2_b"]))
    x = x.reshape(x.shape[0], -1)
    x = jnp.maximum(jnp.dot(x, params["fc1_w"].T, precision=hi) + params["fc1_b"], 0.0)
    x = jnp.maximum(jnp.dot(x, params["fc2_w"].T, precision=hi) + params["fc2_b"], 0.0)
    x = jnp.dot(x, params["fc3_w"].T, precision=hi) + params["fc3_b"]
    return jax.nn.log_softmax(x, axis=-1)


if __name__ == "__main__":
    key = jax.random.PRNGKey(0)
    pkey, xkey = jax.random.split(key)
    params = init_params(pkey)
    # 28x28 single-channel input is implied by the module's view(-1, 256).
    x = jax.random.normal(xkey, (2, 1, 28, 28), jnp.float32)

    pp = prepare_params(params)              # one-time weight re-layout
    fwd = jax.jit(net_forward)
    out = fwd(pp, x)
    jax.block_until_ready(out)
    assert out.shape == (2, 2)

    ref = reference_forward(params, x)
    err = float(jnp.max(jnp.abs(out - ref)))
    # loose tolerance: allows for MXU multi-pass f32 vs XLA HIGHEST differences
    assert err < 5e-2, f"mismatch vs reference: {err}"
    print("KERNEL_OK")
</pallas_src>

<mosaic_0001>
module attributes {stable_mosaic.version = 11 : i64} {
  func.func @_conv_pool_relu_kernel(%arg0: i32, %arg1: memref<4x288x25xf32, #tpu.memory_space<vmem>>, %arg2: memref<25x128xf32, #tpu.memory_space<vmem>>, %arg3: memref<1x128xf32, #tpu.memory_space<vmem>>, %arg4: memref<288x128xf32, #tpu.memory_space<vmem>>) attributes {dimension_semantics = [#tpu.dimension_semantics<parallel>], iteration_bounds = array<i64: 1>, scalar_prefetch = 0 : i64, scratch_operands = 0 : i64, tpu.core_type = #tpu.core_type<tc>, window_params = [{transform_indices = @transform_0, window_bounds = array<i64: 4, 288, 25>}, {pipeline_mode = #tpu.pipeline_mode<synchronous>, transform_indices = @transform_1, window_bounds = array<i64: 25, 128>}, {pipeline_mode = #tpu.pipeline_mode<synchronous>, transform_indices = @transform_2, window_bounds = array<i64: 1, 128>}, {transform_indices = @transform_3, window_bounds = array<i64: 288, 128>}]} {
    %c0 = arith.constant 0 : index
    %c0_0 = arith.constant 0 : index
    %0 = vector.load %arg2[%c0, %c0_0] : memref<25x128xf32, #tpu.memory_space<vmem>>, vector<25x128xf32>
    %c0_1 = arith.constant 0 : index
    %c0_2 = arith.constant 0 : index
    %c0_3 = arith.constant 0 : index
    %1 = vector.load %arg1[%c0_1, %c0_2, %c0_3] : memref<4x288x25xf32, #tpu.memory_space<vmem>>, vector<1x288x25xf32>
    %2 = vector.shape_cast %1 : vector<1x288x25xf32> to vector<288x25xf32>
    %cst = arith.constant dense<0.000000e+00> : vector<288x128xf32>
    %3 = tpu.matmul %2, %0, %cst {dimension_numbers = #tpu.dot_dimension_numbers<[1], [0], [0], [1], [0, 0, 1, 1], [], []>} : vector<288x25xf32>, vector<25x128xf32>, vector<288x128xf32> -> vector<288x128xf32>
    %c1 = arith.constant 1 : index
    %c0_4 = arith.constant 0 : index
    %c0_5 = arith.constant 0 : index
    %4 = vector.load %arg1[%c1, %c0_4, %c0_5] : memref<4x288x25xf32, #tpu.memory_space<vmem>>, vector<1x288x25xf32>
    %5 = vector.shape_cast %4 : vector<1x288x25xf32> to vector<288x25xf32>
    %cst_6 = arith.constant dense<0.000000e+00> : vector<288x128xf32>
    %6 = tpu.matmul %5, %0, %cst_6 {dimension_numbers = #tpu.dot_dimension_numbers<[1], [0], [0], [1], [0, 0, 1, 1], [], []>} : vector<288x25xf32>, vector<25x128xf32>, vector<288x128xf32> -> vector<288x128xf32>
    %c2 = arith.constant 2 : index
    %c0_7 = arith.constant 0 : index
    %c0_8 = arith.constant 0 : index
    %7 = vector.load %arg1[%c2, %c0_7, %c0_8] : memref<4x288x25xf32, #tpu.memory_space<vmem>>, vector<1x288x25xf32>
    %8 = vector.shape_cast %7 : vector<1x288x25xf32> to vector<288x25xf32>
    %cst_9 = arith.constant dense<0.000000e+00> : vector<288x128xf32>
    %9 = tpu.matmul %8, %0, %cst_9 {dimension_numbers = #tpu.dot_dimension_numbers<[1], [0], [0], [1], [0, 0, 1, 1], [], []>} : vector<288x25xf32>, vector<25x128xf32>, vector<288x128xf32> -> vector<288x128xf32>
    %c3 = arith.constant 3 : index
    %c0_10 = arith.constant 0 : index
    %c0_11 = arith.constant 0 : index
    %10 = vector.load %arg1[%c3, %c0_10, %c0_11] : memref<4x288x25xf32, #tpu.memory_space<vmem>>, vector<1x288x25xf32>
    %11 = vector.shape_cast %10 : vector<1x288x25xf32> to vector<288x25xf32>
    %cst_12 = arith.constant dense<0.000000e+00> : vector<288x128xf32>
    %12 = tpu.matmul %11, %0, %cst_12 {dimension_numbers = #tpu.dot_dimension_numbers<[1], [0], [0], [1], [0, 0, 1, 1], [], []>} : vector<288x25xf32>, vector<25x128xf32>, vector<288x128xf32> -> vector<288x128xf32>
    %13 = arith.maximumf %3, %6 : vector<288x128xf32>
    %14 = arith.maximumf %9, %12 : vector<288x128xf32>
    %15 = arith.maximumf %13, %14 : vector<288x128xf32>
    %c0_13 = arith.constant 0 : index
    %c0_14 = arith.constant 0 : index
    %16 = vector.load %arg3[%c0_13, %c0_14] : memref<1x128xf32, #tpu.memory_space<vmem>>, vector<1x128xf32>
    %17 = vector.broadcast %16 : vector<1x128xf32> to vector<288x128xf32>
    %18 = arith.addf %15, %17 : vector<288x128xf32>
    %cst_15 = arith.constant 0.000000e+00 : f32
    %19 = vector.broadcast %cst_15 : f32 to vector<288x128xf32>
    %20 = arith.maximumf %18, %19 : vector<288x128xf32>
    %c0_16 = arith.constant 0 : index
    %c0_17 = arith.constant 0 : index
    %21 = vector.load %arg4[%c0_16, %c0_17] : memref<288x128xf32, #tpu.memory_space<vmem>>, vector<288x128xf32>
    tpu.vector_store %arg4[%c0_16, %c0_17], %20 {strides = array<i32>} : memref<288x128xf32, #tpu.memory_space<vmem>>, vector<288x128xf32>,
    return
  }
  func.func @transform_0(%arg0: i32) -> (i32, i32, i32) {
    %c0_i32 = arith.constant 0 : i32
    %c0_i32_0 = arith.constant 0 : i32
    %c0_i32_1 = arith.constant 0 : i32
    return %c0_i32, %arg0, %c0_i32_0 : i32, i32, i32
  }
  func.func @transform_1(%arg0: i32) -> (i32, i32) {
    %c0_i32 = arith.constant 0 : i32
    %c0_i32_0 = arith.constant 0 : i32
    %c0_i32_1 = arith.constant 0 : i32
    return %c0_i32, %c0_i32_0 : i32, i32
  }
  func.func @transform_2(%arg0: i32) -> (i32, i32) {
    %c0_i32 = arith.constant 0 : i32
    %c0_i32_0 = arith.constant 0 : i32
    %c0_i32_1 = arith.constant 0 : i32
    return %c0_i32, %c0_i32_0 : i32, i32
  }
  func.func @transform_3(%arg0: i32) -> (i32, i32) {
    %c0_i32 = arith.constant 0 : i32
    %c0_i32_0 = arith.constant 0 : i32
    return %arg0, %c0_i32 : i32, i32
  }
}

module attributes {stable_mosaic.version = 11 : i64} {
  func.func @_conv_pool_relu_kernel(%arg0: i32, %arg1: memref<4x32x150xf32, #tpu.memory_space<vmem>>, %arg2: memref<150x128xf32, #tpu.memory_space<vmem>>, %arg3: memref<1x128xf32, #tpu.memory_space<vmem>>, %arg4: memref<32x128xf32, #tpu.memory_space<vmem>>) attributes {dimension_semantics = [#tpu.dimension_semantics<parallel>], iteration_bounds = array<i64: 1>, scalar_prefetch = 0 : i64, scratch_operands = 0 : i64, tpu.core_type = #tpu.core_type<tc>, window_params = [{transform_indices = @transform_0, window_bounds = array<i64: 4, 32, 150>}, {pipeline_mode = #tpu.pipeline_mode<synchronous>, transform_indices = @transform_1, window_bounds = array<i64: 150, 128>}, {pipeline_mode = #tpu.pipeline_mode<synchronous>, transform_indices = @transform_2, window_bounds = array<i64: 1, 128>}, {transform_indices = @transform_3, window_bounds = array<i64: 32, 128>}]} {
    %c0 = arith.constant 0 : index
    %c0_0 = arith.constant 0 : index
    %0 = vector.load %arg2[%c0, %c0_0] : memref<150x128xf32, #tpu.memory_space<vmem>>, vector<150x128xf32>
    %c0_1 = arith.constant 0 : index
    %c0_2 = arith.constant 0 : index
    %c0_3 = arith.constant 0 : index
    %1 = vector.load %arg1[%c0_1, %c0_2, %c0_3] : memref<4x32x150xf32, #tpu.memory_space<vmem>>, vector<1x32x150xf32>
    %2 = vector.shape_cast %1 : vector<1x32x150xf32> to vector<32x150xf32>
    %cst = arith.constant dense<0.000000e+00> : vector<32x128xf32>
    %3 = tpu.matmul %2, %0, %cst {dimension_numbers = #tpu.dot_dimension_numbers<[1], [0], [0], [1], [0, 0, 1, 1], [], []>} : vector<32x150xf32>, vector<150x128xf32>, vector<32x128xf32> -> vector<32x128xf32>
    %c1 = arith.constant 1 : index
    %c0_4 = arith.constant 0 : index
    %c0_5 = arith.constant 0 : index
    %4 = vector.load %arg1[%c1, %c0_4, %c0_5] : memref<4x32x150xf32, #tpu.memory_space<vmem>>, vector<1x32x150xf32>
    %5 = vector.shape_cast %4 : vector<1x32x150xf32> to vector<32x150xf32>
    %cst_6 = arith.constant dense<0.000000e+00> : vector<32x128xf32>
    %6 = tpu.matmul %5, %0, %cst_6 {dimension_numbers = #tpu.dot_dimension_numbers<[1], [0], [0], [1], [0, 0, 1, 1], [], []>} : vector<32x150xf32>, vector<150x128xf32>, vector<32x128xf32> -> vector<32x128xf32>
    %c2 = arith.constant 2 : index
    %c0_7 = arith.constant 0 : index
    %c0_8 = arith.constant 0 : index
    %7 = vector.load %arg1[%c2, %c0_7, %c0_8] : memref<4x32x150xf32, #tpu.memory_space<vmem>>, vector<1x32x150xf32>
    %8 = vector.shape_cast %7 : vector<1x32x150xf32> to vector<32x150xf32>
    %cst_9 = arith.constant dense<0.000000e+00> : vector<32x128xf32>
    %9 = tpu.matmul %8, %0, %cst_9 {dimension_numbers = #tpu.dot_dimension_numbers<[1], [0], [0], [1], [0, 0, 1, 1], [], []>} : vector<32x150xf32>, vector<150x128xf32>, vector<32x128xf32> -> vector<32x128xf32>
    %c3 = arith.constant 3 : index
    %c0_10 = arith.constant 0 : index
    %c0_11 = arith.constant 0 : index
    %10 = vector.load %arg1[%c3, %c0_10, %c0_11] : memref<4x32x150xf32, #tpu.memory_space<vmem>>, vector<1x32x150xf32>
    %11 = vector.shape_cast %10 : vector<1x32x150xf32> to vector<32x150xf32>
    %cst_12 = arith.constant dense<0.000000e+00> : vector<32x128xf32>
    %12 = tpu.matmul %11, %0, %cst_12 {dimension_numbers = #tpu.dot_dimension_numbers<[1], [0], [0], [1], [0, 0, 1, 1], [], []>} : vector<32x150xf32>, vector<150x128xf32>, vector<32x128xf32> -> vector<32x128xf32>
    %13 = arith.maximumf %3, %6 : vector<32x128xf32>
    %14 = arith.maximumf %9, %12 : vector<32x128xf32>
    %15 = arith.maximumf %13, %14 : vector<32x128xf32>
    %c0_13 = arith.constant 0 : index
    %c0_14 = arith.constant 0 : index
    %16 = vector.load %arg3[%c0_13, %c0_14] : memref<1x128xf32, #tpu.memory_space<vmem>>, vector<1x128xf32>
    %17 = vector.broadcast %16 : vector<1x128xf32> to vector<32x128xf32>
    %18 = arith.addf %15, %17 : vector<32x128xf32>
    %cst_15 = arith.constant 0.000000e+00 : f32
    %19 = vector.broadcast %cst_15 : f32 to vector<32x128xf32>
    %20 = arith.maximumf %18, %19 : vector<32x128xf32>
    %c0_16 = arith.constant 0 : index
    %c0_17 = arith.constant 0 : index
    %21 = vector.load %arg4[%c0_16, %c0_17] : memref<32x128xf32, #tpu.memory_space<vmem>>, vector<32x128xf32>
    tpu.vector_store %arg4[%c0_16, %c0_17], %20 {strides = array<i32>} : memref<32x128xf32, #tpu.memory_space<vmem>>, vector<32x128xf32>,
    return
  }
  func.func @transform_0(%arg0: i32) -> (i32, i32, i32) {
    %c0_i32 = arith.constant 0 : i32
    %c0_i32_0 = arith.constant 0 : i32
    %c0_i32_1 = arith.constant 0 : i32
    return %c0_i32, %arg0, %c0_i32_0 : i32, i32, i32
  }
  func.func @transform_1(%arg0: i32) -> (i32, i32) {
    %c0_i32 = arith.constant 0 : i32
    %c0_i32_0 = arith.constant 0 : i32
    %c0_i32_1 = arith.constant 0 : i32
    return %c0_i32, %c0_i32_0 : i32, i32
  }
  func.func @transform_2(%arg0: i32) -> (i32, i32) {
    %c0_i32 = arith.constant 0 : i32
    %c0_i32_0 = arith.constant 0 : i32
    %c0_i32_1 = arith.constant 0 : i32
    return %c0_i32, %c0_i32_0 : i32, i32
  }
  func.func @transform_3(%arg0: i32) -> (i32, i32) {
    %c0_i32 = arith.constant 0 : i32
    %c0_i32_0 = arith.constant 0 : i32
    return %arg0, %c0_i32 : i32, i32
  }
}

module attributes {stable_mosaic.version = 11 : i64} {
  func.func @_fc_head_kernel(%arg0: i32, %arg1: memref<8x256xf32, #tpu.memory_space<vmem>>, %arg2: memref<256x128xf32, #tpu.memory_space<vmem>>, %arg3: memref<1x128xf32, #tpu.memory_space<vmem>>, %arg4: memref<128x128xf32, #tpu.memory_space<vmem>>, %arg5: memref<1x128xf32, #tpu.memory_space<vmem>>, %arg6: memref<128x128xf32, #tpu.memory_space<vmem>>, %arg7: memref<1x128xf32, #tpu.memory_space<vmem>>, %arg8: memref<8x128xf32, #tpu.memory_space<vmem>>) attributes {dimension_semantics = [#tpu.dimension_semantics<parallel>], iteration_bounds = array<i64: 1>, scalar_prefetch = 0 : i64, scratch_operands = 0 : i64, tpu.core_type = #tpu.core_type<tc>, window_params = [{transform_indices = @transform_0, window_bounds = array<i64: 8, 256>}, {pipeline_mode = #tpu.pipeline_mode<synchronous>, transform_indices = @transform_1, window_bounds = array<i64: 256, 128>}, {pipeline_mode = #tpu.pipeline_mode<synchronous>, transform_indices = @transform_2, window_bounds = array<i64: 1, 128>}, {pipeline_mode = #tpu.pipeline_mode<synchronous>, transform_indices = @transform_3, window_bounds = array<i64: 128, 128>}, {pipeline_mode = #tpu.pipeline_mode<synchronous>, transform_indices = @transform_4, window_bounds = array<i64: 1, 128>}, {pipeline_mode = #tpu.pipeline_mode<synchronous>, transform_indices = @transform_5, window_bounds = array<i64: 128, 128>}, {pipeline_mode = #tpu.pipeline_mode<synchronous>, transform_indices = @transform_6, window_bounds = array<i64: 1, 128>}, {transform_indices = @transform_7, window_bounds = array<i64: 8, 128>}]} {
    %c0 = arith.constant 0 : index
    %c0_0 = arith.constant 0 : index
    %0 = vector.load %arg1[%c0, %c0_0] : memref<8x256xf32, #tpu.memory_space<vmem>>, vector<8x256xf32>
    %c0_1 = arith.constant 0 : index
    %c0_2 = arith.constant 0 : index
    %1 = vector.load %arg2[%c0_1, %c0_2] : memref<256x128xf32, #tpu.memory_space<vmem>>, vector<256x128xf32>
    %cst = arith.constant dense<0.000000e+00> : vector<8x128xf32>
    %2 = tpu.matmul %0, %1, %cst {dimension_numbers = #tpu.dot_dimension_numbers<[1], [0], [0], [1], [0, 0, 1, 1], [], []>} : vector<8x256xf32>, vector<256x128xf32>, vector<8x128xf32> -> vector<8x128xf32>
    %c0_3 = arith.constant 0 : index
    %c0_4 = arith.constant 0 : index
    %3 = vector.load %arg3[%c0_3, %c0_4] : memref<1x128xf32, #tpu.memory_space<vmem>>, vector<1x128xf32>
    %4 = vector.broadcast %3 : vector<1x128xf32> to vector<8x128xf32>
    %5 = arith.addf %2, %4 : vector<8x128xf32>
    %cst_5 = arith.constant 0.000000e+00 : f32
    %6 = vector.broadcast %cst_5 : f32 to vector<8x128xf32>
    %7 = arith.maximumf %5, %6 : vector<8x128xf32>
    %c0_6 = arith.constant 0 : index
    %c0_7 = arith.constant 0 : index
    %8 = vector.load %arg4[%c0_6, %c0_7] : memref<128x128xf32, #tpu.memory_space<vmem>>, vector<128x128xf32>
    %cst_8 = arith.constant dense<0.000000e+00> : vector<8x128xf32>
    %9 = tpu.matmul %7, %8, %cst_8 {dimension_numbers = #tpu.dot_dimension_numbers<[1], [0], [0], [1], [0, 0, 1, 1], [], []>} : vector<8x128xf32>, vector<128x128xf32>, vector<8x128xf32> -> vector<8x128xf32>
    %c0_9 = arith.constant 0 : index
    %c0_10 = arith.constant 0 : index
    %10 = vector.load %arg5[%c0_9, %c0_10] : memref<1x128xf32, #tpu.memory_space<vmem>>, vector<1x128xf32>
    %11 = vector.broadcast %10 : vector<1x128xf32> to vector<8x128xf32>
    %12 = arith.addf %9, %11 : vector<8x128xf32>
    %cst_11 = arith.constant 0.000000e+00 : f32
    %13 = vector.broadcast %cst_11 : f32 to vector<8x128xf32>
    %14 = arith.maximumf %12, %13 : vector<8x128xf32>
    %c0_12 = arith.constant 0 : index
    %c0_13 = arith.constant 0 : index
    %15 = vector.load %arg6[%c0_12, %c0_13] : memref<128x128xf32, #tpu.memory_space<vmem>>, vector<128x128xf32>
    %cst_14 = arith.constant dense<0.000000e+00> : vector<8x128xf32>
    %16 = tpu.matmul %14, %15, %cst_14 {dimension_numbers = #tpu.dot_dimension_numbers<[1], [0], [0], [1], [0, 0, 1, 1], [], []>} : vector<8x128xf32>, vector<128x128xf32>, vector<8x128xf32> -> vector<8x128xf32>
    %c0_15 = arith.constant 0 : index
    %c0_16 = arith.constant 0 : index
    %17 = vector.load %arg7[%c0_15, %c0_16] : memref<1x128xf32, #tpu.memory_space<vmem>>, vector<1x128xf32>
    %18 = vector.broadcast %17 : vector<1x128xf32> to vector<8x128xf32>
    %19 = arith.addf %16, %18 : vector<8x128xf32>
    %cst_17 = arith.constant dense<0xFF800000> : vector<8xf32>
    %20 = vector.multi_reduction <maximumf>, %19, %cst_17 [1] : vector<8x128xf32> to vector<8xf32>
    %21 = vector.shape_cast %20 : vector<8xf32> to vector<8x1xf32>
    %22 = vector.broadcast %21 : vector<8x1xf32> to vector<8x128xf32>
    %23 = arith.subf %19, %22 : vector<8x128xf32>
    %24 = math.exp %23 : vector<8x128xf32>
    %cst_18 = arith.constant dense<0.000000e+00> : vector<8xf32>
    %25 = vector.multi_reduction <add>, %24, %cst_18 [1] : vector<8x128xf32> to vector<8xf32>
    %26 = vector.shape_cast %25 : vector<8xf32> to vector<8x1xf32>
    %27 = vector.broadcast %21 : vector<8x1xf32> to vector<8x128xf32>
    %28 = arith.subf %19, %27 : vector<8x128xf32>
    %29 = math.log %26 : vector<8x1xf32>
    %30 = vector.broadcast %29 : vector<8x1xf32> to vector<8x128xf32>
    %31 = arith.subf %28, %30 : vector<8x128xf32>
    %c0_19 = arith.constant 0 : index
    %c0_20 = arith.constant 0 : index
    %32 = vector.load %arg8[%c0_19, %c0_20] : memref<8x128xf32, #tpu.memory_space<vmem>>, vector<8x128xf32>
    tpu.vector_store %arg8[%c0_19, %c0_20], %31 {strides = array<i32>} : memref<8x128xf32, #tpu.memory_space<vmem>>, vector<8x128xf32>,
    return
  }
  func.func @transform_0(%arg0: i32) -> (i32, i32) {
    %c0_i32 = arith.constant 0 : i32
    %c0_i32_0 = arith.constant 0 : i32
    return %arg0, %c0_i32 : i32, i32
  }
  func.func @transform_1(%arg0: i32) -> (i32, i32) {
    %c0_i32 = arith.constant 0 : i32
    %c0_i32_0 = arith.constant 0 : i32
    %c0_i32_1 = arith.constant 0 : i32
    return %c0_i32, %c0_i32_0 : i32, i32
  }
  func.func @transform_2(%arg0: i32) -> (i32, i32) {
    %c0_i32 = arith.constant 0 : i32
    %c0_i32_0 = arith.constant 0 : i32
    %c0_i32_1 = arith.constant 0 : i32
    return %c0_i32, %c0_i32_0 : i32, i32
  }
  func.func @transform_3(%arg0: i32) -> (i32, i32) {
    %c0_i32 = arith.constant 0 : i32
    %c0_i32_0 = arith.constant 0 : i32
    %c0_i32_1 = arith.constant 0 : i32
    return %c0_i32, %c0_i32_0 : i32, i32
  }
  func.func @transform_4(%arg0: i32) -> (i32, i32) {
    %c0_i32 = arith.constant 0 : i32
    %c0_i32_0 = arith.constant 0 : i32
    %c0_i32_1 = arith.constant 0 : i32
    return %c0_i32, %c0_i32_0 : i32, i32
  }
  func.func @transform_5(%arg0: i32) -> (i32, i32) {
    %c0_i32 = arith.constant 0 : i32
    %c0_i32_0 = arith.constant 0 : i32
    %c0_i32_1 = arith.constant 0 : i32
    return %c0_i32, %c0_i32_0 : i32, i32
  }
  func.func @transform_6(%arg0: i32) -> (i32, i32) {
    %c0_i32 = arith.constant 0 : i32
    %c0_i32_0 = arith.constant 0 : i32
    %c0_i32_1 = arith.constant 0 : i32
    return %c0_i32, %c0_i32_0 : i32, i32
  }
  func.func @transform_7(%arg0: i32) -> (i32, i32) {
    %c0_i32 = arith.constant 0 : i32
    %c0_i32_0 = arith.constant 0 : i32
    return %arg0, %c0_i32 : i32, i32
  }
}

</mosaic_0001>

<bundles_post_ra>
// kernel: net_forward.3
= control target key start
LH: loop header
LB: loop body
LE: loop exit
PB: predicated region body
PF: predicated region fallthrough
CT: control target
= control target key end

     0   :  { %vm163_vm0 = vcmask 1040384   ;;  %vm54_vm1 = vcmask 203776   ;;  %vm2515_vm2 = vmmov 1   ;;  %s3617_s1 = inlined_call_operand.vmem [shape: f32[25,128], index: 1, kind: input, shape index: {}]   ;;  %s3618_s0 = inlined_call_operand.vmem [shape: f32[4,288,25], index: 0, kind: input, shape index: {}]   ;;  %s3619_s2 = inlined_call_operand.vmem [shape: f32[1,128], index: 2, kind: input, shape index: {}]   ;;  %s3620_s3 = inlined_call_operand.vmem [shape: f32[288,128], index: 3, kind: output, shape index: {}]  }
   0x1   :  { %v14_v0 = vld [vmem:[%s3617_s1] sm:$0xff]  ;;  %v15_v1 = vld [vmem:[%s3617_s1 + $0x8] sm:$0xff]  ;;  %v16_v2 = vld [vmem:[%s3617_s1 + $0x10] sm:$0xff] }
   0x2   :  { %v2474_v3 = vpack.c.bf16 %v15_v1, %v14_v0  ;;  %v17_v4 = vld [vmem:[%s3617_s1 + $0x18] sm:$0x1]  ;;  %v18_v5 = vld [vmem:[%s3618_s0] sm:$0xff]  ;;  %vm2551_vm3 = vmpackc.low %vm163_vm0, %vm2515_vm2 }
   0x3   :  { %v2478_v6 = vpack.c.bf16 %v17_v4, %v16_v2  ;;  %2234 = vmatprep.mubr.msk.f32.mxu0 %vm54_vm1, %v18_v5  ;;  %v1846_v8 = vld [vmem:[%s3618_s0 + $0x120] sm:$0xff]  ;;  %v19_v9 = vld [vmem:[%s3618_s0 + $0x8] sm:$0xff]  ;;  %v20_v11 = vld [vmem:[%s3618_s0 + $0x10] sm:$0xff] }
   0x4   :  { %2475 = vmatprep.subr.bf16.mxu0 %v2474_v3  ;;  %2485 = vmatprep.subr.bf16.mxu1 %v2474_v3  ;;  %v1847_v10 = vld [vmem:[%s3618_s0 + $0x128] sm:$0xff]  ;;  %v1848_v12 = vld [vmem:[%s3618_s0 + $0x130] sm:$0xff]  ;;  %v21_v13 = vld [vmem:[%s3618_s0 + $0x18] sm:$0xff] }
   0x5   :  { %2477 = vmatpush3.bf16.msra.mxu0 %v2474_v3  ;;  %2487 = vmatpush3.bf16.msra.mxu1 %v2474_v3  ;;  %v1849_v14 = vld [vmem:[%s3618_s0 + $0x138] sm:$0xff]  ;;  %v22_v15 = vld [vmem:[%s3618_s0 + $0x20] sm:$0xff]  ;;  %v23_v17 = vld [vmem:[%s3618_s0 + $0x28] sm:$0xff] }
   0x6   :  { %2480 = vmatprep.subr.msk.bf16.mxu0 %vm2551_vm3, %v2478_v6  ;;  %2490 = vmatprep.subr.msk.bf16.mxu1 %vm2551_vm3, %v2478_v6  ;;  %v1850_v16 = vld [vmem:[%s3618_s0 + $0x140] sm:$0xff]  ;;  %v1851_v18 = vld [vmem:[%s3618_s0 + $0x148] sm:$0xff]  ;;  %v24_v19 = vld [vmem:[%s3618_s0 + $0x30] sm:$0xff] }
   0x7   :  { %2296 = vmatprep.mubr.msk.f32.mxu1 %vm54_vm1, %v1846_v8  ;;  %v1852_v20 = vld [vmem:[%s3618_s0 + $0x150] sm:$0xff]  ;;  %v25_v21 = vld [vmem:[%s3618_s0 + $0x38] sm:$0xff]  ;;  %v26_v23 = vld [vmem:[%s3618_s0 + $0x40] sm:$0xff] }
   0x8   :  { %v1853_v22 = vld [vmem:[%s3618_s0 + $0x158] sm:$0xff]  ;;  %v1854_v24 = vld [vmem:[%s3618_s0 + $0x160] sm:$0xff]  ;;  %v27_v25 = vld [vmem:[%s3618_s0 + $0x48] sm:$0xff] }
   0x9   :  { %2483 = vmatpush3.bf16.msk.msra.mxu0 %vm2551_vm3, %v2478_v6  ;;  %2493 = vmatpush3.bf16.msk.msra.mxu1 %vm2551_vm3, %v2478_v6  ;;  %v1855_v26 = vld [vmem:[%s3618_s0 + $0x168] sm:$0xff]  ;;  %v28_v27 = vld [vmem:[%s3618_s0 + $0x50] sm:$0xff]  ;;  %v29_v29 = vld [vmem:[%s3618_s0 + $0x58] sm:$0xff] }
   0xa   :  { %2495 = vmatprep.subr.bf16.mxu0 %v2474_v3  ;;  %2505 = vmatprep.subr.bf16.mxu1 %v2474_v3  ;;  %v1856_v28 = vld [vmem:[%s3618_s0 + $0x170] sm:$0xff]  ;;  %v1857_v30 = vld [vmem:[%s3618_s0 + $0x178] sm:$0xff]  ;;  %v30_v31 = vld [vmem:[%s3618_s0 + $0x60] sm:$0xff] }
   0xb   :  { %v1858_v32 = vld [vmem:[%s3618_s0 + $0x180] sm:$0xff]  ;;  %v31_v33 = vld [vmem:[%s3618_s0 + $0x68] sm:$0xff]  ;;  %v32_v35 = vld [vmem:[%s3618_s0 + $0x70] sm:$0xff] }
   0xc   :  { %2235 = vmatmul.mubr.msk.f32.vlgmr.msra.gmra.mrb[0].mxu0 %vm54_vm1, %v19_v9  ;;  %2297 = vmatmul.mubr.msk.f32.vlgmr.msra.gmra.mrb[0].mxu1 %vm54_vm1, %v1847_v10  ;;  %v1859_v34 = vld [vmem:[%s3618_s0 + $0x188] sm:$0xff]  ;;  %v1860_v36 = vld [vmem:[%s3618_s0 + $0x190] sm:$0xff]  ;;  %v33_v37 = vld [vmem:[%s3618_s0 + $0x78] sm:$0xff] }
   0xd   :  { %2497 = vmatpush3.bf16.msra.mxu0 %v2474_v3  ;;  %2507 = vmatpush3.bf16.msra.mxu1 %v2474_v3  ;;  %v1861_v38 = vld [vmem:[%s3618_s0 + $0x198] sm:$0xff]  ;;  %v34_v39 = vld [vmem:[%s3618_s0 + $0x80] sm:$0xff]  ;;  %v35_v41 = vld [vmem:[%s3618_s0 + $0x88] sm:$0xff] }
   0xe   :  { %2237 = vmatprep.mubr.msk.f32.mxu0 %vm54_vm1, %v20_v11  ;;  %2299 = vmatprep.mubr.msk.f32.mxu1 %vm54_vm1, %v1848_v12  ;;  %v1862_v40 = vld [vmem:[%s3618_s0 + $0x1a0] sm:$0xff]  ;;  %v1863_v42 = vld [vmem:[%s3618_s0 + $0x1a8] sm:$0xff]  ;;  %v36_v43 = vld [vmem:[%s3618_s0 + $0x90] sm:$0xff] }
   0xf   :  { %2500 = vmatprep.subr.msk.bf16.mxu0 %vm2551_vm3, %v2478_v6  ;;  %2510 = vmatprep.subr.msk.bf16.mxu1 %vm2551_vm3, %v2478_v6  ;;  %v1864_v44 = vld [vmem:[%s3618_s0 + $0x1b0] sm:$0xff]  ;;  %v37_v45 = vld [vmem:[%s3618_s0 + $0x98] sm:$0xff]  ;;  %v38_v47 = vld [vmem:[%s3618_s0 + $0xa0] sm:$0xff] }
  0x10   :  { %2238 = vmatmul.mubr.msk.f32.gmra.mrb[2].mxu0 %vm54_vm1, %v21_v13  ;;  %2300 = vmatmul.mubr.msk.f32.gmra.mrb[2].mxu1 %vm54_vm1, %v1849_v14  ;;  %v1865_v46 = vld [vmem:[%s3618_s0 + $0x1b8] sm:$0xff]  ;;  %v1866_v48 = vld [vmem:[%s3618_s0 + $0x1c0] sm:$0xff]  ;;  %v39_v49 = vld [vmem:[%s3618_s0 + $0xa8] sm:$0xff] }
  0x11   :  { %2240 = vmatprep.mubr.msk.f32.mxu0 %vm54_vm1, %v22_v15  ;;  %2302 = vmatprep.mubr.msk.f32.mxu1 %vm54_vm1, %v1850_v16  ;;  %v1867_v50 = vld [vmem:[%s3618_s0 + $0x1c8] sm:$0xff]  ;;  %v40_v51 = vld [vmem:[%s3618_s0 + $0xb0] sm:$0xff]  ;;  %v41_v53 = vld [vmem:[%s3618_s0 + $0xb8] sm:$0xff] }
  0x12   :  { %2503 = vmatpush3.bf16.msk.msra.mxu0 %vm2551_vm3, %v2478_v6  ;;  %2513 = vmatpush3.bf16.msk.msra.mxu1 %vm2551_vm3, %v2478_v6  ;;  %v1868_v52 = vld [vmem:[%s3618_s0 + $0x1d0] sm:$0xff]  ;;  %v1869_v54 = vld [vmem:[%s3618_s0 + $0x1d8] sm:$0xff]  ;;  %v42_v55 = vld [vmem:[%s3618_s0 + $0xc0] sm:$0xff] }
  0x13   :  { %v1870_v56 = vld [vmem:[%s3618_s0 + $0x1e0] sm:$0xff]  ;;  %v43_v57 = vld [vmem:[%s3618_s0 + $0xc8] sm:$0xff]  ;;  %v44_v59 = vld [vmem:[%s3618_s0 + $0xd0] sm:$0xff] }
  0x14   :  { %2241 = vmatmul.mubr.msk.f32.gmra.mrb[4].mxu0 %vm54_vm1, %v23_v17  ;;  %2303 = vmatmul.mubr.msk.f32.gmra.mrb[4].mxu1 %vm54_vm1, %v1851_v18  ;;  %v1871_v58 = vld [vmem:[%s3618_s0 + $0x1e8] sm:$0xff]  ;;  %v1872_v60 = vld [vmem:[%s3618_s0 + $0x1f0] sm:$0xff]  ;;  %v45_v61 = vld [vmem:[%s3618_s0 + $0xd8] sm:$0xff] }
  0x15   :  { %2243 = vmatprep.mubr.msk.f32.mxu0 %vm54_vm1, %v24_v19  ;;  %2305 = vmatprep.mubr.msk.f32.mxu1 %vm54_vm1, %v1852_v20  ;;  %v1873_v62 = vld [vmem:[%s3618_s0 + $0x1f8] sm:$0xff]  ;;  %v46_v63 = vld [vmem:[%s3618_s0 + $0xe0] sm:$0xff]  ;;  %v47_v1 = vld [vmem:[%s3618_s0 + $0xe8] sm:$0xff] }
  0x16   :  { %v1874_v0 = vld [vmem:[%s3618_s0 + $0x200] sm:$0xff]  ;;  %v1875_v2 = vld [vmem:[%s3618_s0 + $0x208] sm:$0xff]  ;;  %v48_v3 = vld [vmem:[%s3618_s0 + $0xf0] sm:$0xff] }
  0x17   :  { %v1876_v4 = vld [vmem:[%s3618_s0 + $0x210] sm:$0xff]  ;;  %v49_v5 = vld [vmem:[%s3618_s0 + $0xf8] sm:$0xff]  ;;  %v50_v7 = vld [vmem:[%s3618_s0 + $0x100] sm:$0xff] }
  0x18   :  { %2244 = vmatmul.mubr.msk.f32.gmra.mrb[6].mxu0 %vm54_vm1, %v25_v21  ;;  %2306 = vmatmul.mubr.msk.f32.gmra.mrb[6].mxu1 %vm54_vm1, %v1853_v22  ;;  %v1877_v6 = vld [vmem:[%s3618_s0 + $0x218] sm:$0xff]  ;;  %v1878_v8 = vld [vmem:[%s3618_s0 + $0x220] sm:$0xff]  ;;  %v51_v9 = vld [vmem:[%s3618_s0 + $0x108] sm:$0xff] }
  0x19   :  { %2246 = vmatprep.mubr.msk.f32.mxu0 %vm54_vm1, %v26_v23  ;;  %2308 = vmatprep.mubr.msk.f32.mxu1 %vm54_vm1, %v1854_v24  ;;  %v1879_v10 = vld [vmem:[%s3618_s0 + $0x228] sm:$0xff]  ;;  %v52_v11 = vld [vmem:[%s3618_s0 + $0x110] sm:$0xff]  ;;  %v53_v13 = vld [vmem:[%s3618_s0 + $0x118] sm:$0xff] }
  0x1a   :  { %v1880_v12 = vld [vmem:[%s3618_s0 + $0x230] sm:$0xff]  ;;  %v1881_v14 = vld [vmem:[%s3618_s0 + $0x238] sm:$0xff]  ;;  %v1919_v15 = vld [vmem:[%s3618_s0 + $0x240] sm:$0xff] }
  0x1b   :  { %v1992_v16 = vld [vmem:[%s3618_s0 + $0x360] sm:$0xff]  ;;  %v1920_v17 = vld [vmem:[%s3618_s0 + $0x248] sm:$0xff]  ;;  %v1921_v19 = vld [vmem:[%s3618_s0 + $0x250] sm:$0xff] }
  0x1c   :  { %2247 = vmatmul.mubr.msk.f32.gmra.mrb[8].mxu0 %vm54_vm1, %v27_v25  ;;  %2309 = vmatmul.mubr.msk.f32.gmra.mrb[8].mxu1 %vm54_vm1, %v1855_v26  ;;  %v1993_v18 = vld [vmem:[%s3618_s0 + $0x368] sm:$0xff]  ;;  %v1994_v20 = vld [vmem:[%s3618_s0 + $0x370] sm:$0xff]  ;;  %v1922_v21 = vld [vmem:[%s3618_s0 + $0x258] sm:$0xff] }
  0x1d   :  { %2249 = vmatprep.mubr.msk.f32.mxu0 %vm54_vm1, %v28_v27  ;;  %2311 = vmatprep.mubr.msk.f32.mxu1 %vm54_vm1, %v1856_v28  ;;  %v1995_v22 = vld [vmem:[%s3618_s0 + $0x378] sm:$0xff]  ;;  %v1923_v23 = vld [vmem:[%s3618_s0 + $0x260] sm:$0xff]  ;;  %v1924_v25 = vld [vmem:[%s3618_s0 + $0x268] sm:$0xff] }
  0x1e   :  { %v1996_v24 = vld [vmem:[%s3618_s0 + $0x380] sm:$0xff]  ;;  %v1997_v26 = vld [vmem:[%s3618_s0 + $0x388] sm:$0xff]  ;;  %v1925_v27 = vld [vmem:[%s3618_s0 + $0x270] sm:$0xff] }
  0x1f   :  { %v1998_v28 = vld [vmem:[%s3618_s0 + $0x390] sm:$0xff] }
  0x20   :  { %2250 = vmatmul.mubr.msk.f32.gmra.mrb[10].mxu0 %vm54_vm1, %v29_v29  ;;  %2312 = vmatmul.mubr.msk.f32.gmra.mrb[10].mxu1 %vm54_vm1, %v1857_v30  ;;  %v1926_v29 = vld [vmem:[%s3618_s0 + $0x278] sm:$0xff] }
  0x21   :  { %2252 = vmatprep.mubr.msk.f32.mxu0 %vm54_vm1, %v30_v31  ;;  %2314 = vmatprep.mubr.msk.f32.mxu1 %vm54_vm1, %v1858_v32  ;;  %v1999_v30 = vld [vmem:[%s3618_s0 + $0x398] sm:$0xff]  ;;  %v1927_v31 = vld [vmem:[%s3618_s0 + $0x280] sm:$0xff] }
  0x22   :  { %v2000_v32 = vld [vmem:[%s3618_s0 + $0x3a0] sm:$0xff] }
  0x24   :  { %2253 = vmatmul.mubr.msk.f32.gmra.mrb[12].mxu0 %vm54_vm1, %v31_v33  ;;  %2315 = vmatmul.mubr.msk.f32.gmra.mrb[12].mxu1 %vm54_vm1, %v1859_v34  ;;  %v1928_v33 = vld [vmem:[%s3618_s0 + $0x288] sm:$0xff] }
  0x25   :  { %2255 = vmatprep.mubr.msk.f32.mxu0 %vm54_vm1, %v32_v35  ;;  %2317 = vmatprep.mubr.msk.f32.mxu1 %vm54_vm1, %v1860_v36  ;;  %v2001_v34 = vld [vmem:[%s3618_s0 + $0x3a8] sm:$0xff]  ;;  %v1929_v35 = vld [vmem:[%s3618_s0 + $0x290] sm:$0xff] }
  0x26   :  { %v2002_v36 = vld [vmem:[%s3618_s0 + $0x3b0] sm:$0xff] }
  0x28   :  { %2256 = vmatmul.mubr.msk.f32.gmra.mrb[14].mxu0 %vm54_vm1, %v33_v37  ;;  %2318 = vmatmul.mubr.msk.f32.gmra.mrb[14].mxu1 %vm54_vm1, %v1861_v38  ;;  %v1930_v37 = vld [vmem:[%s3618_s0 + $0x298] sm:$0xff] }
  0x29   :  { %2258 = vmatprep.mubr.msk.f32.mxu0 %vm54_vm1, %v34_v39  ;;  %2320 = vmatprep.mubr.msk.f32.mxu1 %vm54_vm1, %v1862_v40  ;;  %v2003_v38 = vld [vmem:[%s3618_s0 + $0x3b8] sm:$0xff]  ;;  %v1931_v39 = vld [vmem:[%s3618_s0 + $0x2a0] sm:$0xff] }
  0x2a   :  { %v2004_v40 = vld [vmem:[%s3618_s0 + $0x3c0] sm:$0xff] }
  0x2c   :  { %2259 = vmatmul.mubr.msk.f32.gmra.mrb[16].mxu0 %vm54_vm1, %v35_v41  ;;  %2321 = vmatmul.mubr.msk.f32.gmra.mrb[16].mxu1 %vm54_vm1, %v1863_v42  ;;  %v1932_v41 = vld [vmem:[%s3618_s0 + $0x2a8] sm:$0xff] }
  0x2d   :  { %2261 = vmatprep.mubr.msk.f32.mxu0 %vm54_vm1, %v36_v43  ;;  %2323 = vmatprep.mubr.msk.f32.mxu1 %vm54_vm1, %v1864_v44  ;;  %v2005_v42 = vld [vmem:[%s3618_s0 + $0x3c8] sm:$0xff]  ;;  %v1933_v43 = vld [vmem:[%s3618_s0 + $0x2b0] sm:$0xff] }
  0x2e   :  { %v2006_v44 = vld [vmem:[%s3618_s0 + $0x3d0] sm:$0xff] }
  0x30   :  { %2262 = vmatmul.mubr.msk.f32.gmra.mrb[18].mxu0 %vm54_vm1, %v37_v45  ;;  %2324 = vmatmul.mubr.msk.f32.gmra.mrb[18].mxu1 %vm54_vm1, %v1865_v46  ;;  %v1934_v45 = vld [vmem:[%s3618_s0 + $0x2b8] sm:$0xff] }
  0x31   :  { %2264 = vmatprep.mubr.msk.f32.mxu0 %vm54_vm1, %v38_v47  ;;  %2326 = vmatprep.mubr.msk.f32.mxu1 %vm54_vm1, %v1866_v48  ;;  %v2007_v46 = vld [vmem:[%s3618_s0 + $0x3d8] sm:$0xff]  ;;  %v1935_v47 = vld [vmem:[%s3618_s0 + $0x2c0] sm:$0xff] }
  0x32   :  { %v2008_v48 = vld [vmem:[%s3618_s0 + $0x3e0] sm:$0xff] }
  0x34   :  { %2265 = vmatmul.mubr.msk.f32.gmra.mrb[20].mxu0 %vm54_vm1, %v39_v49  ;;  %2327 = vmatmul.mubr.msk.f32.gmra.mrb[20].mxu1 %vm54_vm1, %v1867_v50  ;;  %v1936_v49 = vld [vmem:[%s3618_s0 + $0x2c8] sm:$0xff] }
  0x35   :  { %2267 = vmatprep.mubr.msk.f32.mxu0 %vm54_vm1, %v40_v51  ;;  %2329 = vmatprep.mubr.msk.f32.mxu1 %vm54_vm1, %v1868_v52  ;;  %v2009_v50 = vld [vmem:[%s3618_s0 + $0x3e8] sm:$0xff]  ;;  %v1937_v51 = vld [vmem:[%s3618_s0 + $0x2d0] sm:$0xff] }
  0x36   :  { %v2010_v52 = vld [vmem:[%s3618_s0 + $0x3f0] sm:$0xff] }
  0x38   :  { %2268 = vmatmul.mubr.msk.f32.gmra.mrb[22].mxu0 %vm54_vm1, %v41_v53  ;;  %2330 = vmatmul.mubr.msk.f32.gmra.mrb[22].mxu1 %vm54_vm1, %v1869_v54  ;;  %v1938_v53 = vld [vmem:[%s3618_s0 + $0x2d8] sm:$0xff] }
  0x39   :  { %2270 = vmatprep.mubr.msk.f32.mxu0 %vm54_vm1, %v42_v55  ;;  %2332 = vmatprep.mubr.msk.f32.mxu1 %vm54_vm1, %v1870_v56  ;;  %v2011_v54 = vld [vmem:[%s3618_s0 + $0x3f8] sm:$0xff]  ;;  %v1939_v55 = vld [vmem:[%s3618_s0 + $0x2e0] sm:$0xff] }
  0x3a   :  { %v2012_v56 = vld [vmem:[%s3618_s0 + $0x400] sm:$0xff] }
  0x3c   :  { %2271 = vmatmul.mubr.msk.f32.gmra.mrb[24].mxu0 %vm54_vm1, %v43_v57  ;;  %2333 = vmatmul.mubr.msk.f32.gmra.mrb[24].mxu1 %vm54_vm1, %v1871_v58  ;;  %v1940_v57 = vld [vmem:[%s3618_s0 + $0x2e8] sm:$0xff] }
  0x3d   :  { %2273 = vmatprep.mubr.msk.f32.mxu0 %vm54_vm1, %v44_v59  ;;  %2335 = vmatprep.mubr.msk.f32.mxu1 %vm54_vm1, %v1872_v60  ;;  %v2013_v58 = vld [vmem:[%s3618_s0 + $0x408] sm:$0xff]  ;;  %v1941_v59 = vld [vmem:[%s3618_s0 + $0x2f0] sm:$0xff] }
  0x3e   :  { %v2014_v60 = vld [vmem:[%s3618_s0 + $0x410] sm:$0xff] }
  0x40   :  { %2274 = vmatmul.mubr.msk.f32.gmra.mrb[26].mxu0 %vm54_vm1, %v45_v61  ;;  %2336 = vmatmul.mubr.msk.f32.gmra.mrb[26].mxu1 %vm54_vm1, %v1873_v62  ;;  %v1942_v61 = vld [vmem:[%s3618_s0 + $0x2f8] sm:$0xff] }
  0x41   :  { %2276 = vmatprep.mubr.msk.f32.mxu0 %vm54_vm1, %v46_v63  ;;  %2338 = vmatprep.mubr.msk.f32.mxu1 %vm54_vm1, %v1874_v0  ;;  %v2015_v62 = vld [vmem:[%s3618_s0 + $0x418] sm:$0xff]  ;;  %v1943_v63 = vld [vmem:[%s3618_s0 + $0x300] sm:$0xff] }
  0x42   :  { %v2016_v0 = vld [vmem:[%s3618_s0 + $0x420] sm:$0xff] }
  0x44   :  { %2277 = vmatmul.mubr.msk.f32.gmra.mrb[28].mxu0 %vm54_vm1, %v47_v1  ;;  %2339 = vmatmul.mubr.msk.f32.gmra.mrb[28].mxu1 %vm54_vm1, %v1875_v2  ;;  %v1944_v1 = vld [vmem:[%s3618_s0 + $0x308] sm:$0xff] }
  0x45   :  { %2279 = vmatprep.mubr.msk.f32.mxu0 %vm54_vm1, %v48_v3  ;;  %2341 = vmatprep.mubr.msk.f32.mxu1 %vm54_vm1, %v1876_v4  ;;  %v2017_v2 = vld [vmem:[%s3618_s0 + $0x428] sm:$0xff]  ;;  %v1945_v3 = vld [vmem:[%s3618_s0 + $0x310] sm:$0xff] }
  0x46   :  { %v2018_v4 = vld [vmem:[%s3618_s0 + $0x430] sm:$0xff] }
  0x48   :  { %2280 = vmatmul.mubr.msk.f32.gmra.mrb[30].mxu0 %vm54_vm1, %v49_v5  ;;  %2342 = vmatmul.mubr.msk.f32.gmra.mrb[30].mxu1 %vm54_vm1, %v1877_v6  ;;  %v1946_v5 = vld [vmem:[%s3618_s0 + $0x318] sm:$0xff] }
  0x49   :  { %2282 = vmatprep.mubr.msk.f32.mxu0 %vm54_vm1, %v50_v7  ;;  %2344 = vmatprep.mubr.msk.f32.mxu1 %vm54_vm1, %v1878_v8  ;;  %v2019_v6 = vld [vmem:[%s3618_s0 + $0x438] sm:$0xff]  ;;  %v1947_v7 = vld [vmem:[%s3618_s0 + $0x320] sm:$0xff] }
  0x4a   :  { %v2020_v8 = vld [vmem:[%s3618_s0 + $0x440] sm:$0xff] }
  0x4c   :  { %2283 = vmatmul.mubr.msk.f32.gmra.mrb[32].mxu0 %vm54_vm1, %v51_v9  ;;  %2345 = vmatmul.mubr.msk.f32.gmra.mrb[32].mxu1 %vm54_vm1, %v1879_v10  ;;  %v1948_v9 = vld [vmem:[%s3618_s0 + $0x328] sm:$0xff] }
  0x4d   :  { %2285 = vmatprep.mubr.msk.f32.mxu0 %vm54_vm1, %v52_v11  ;;  %2347 = vmatprep.mubr.msk.f32.mxu1 %vm54_vm1, %v1880_v12  ;;  %v2021_v10 = vld [vmem:[%s3618_s0 + $0x448] sm:$0xff]  ;;  %v1949_v11 = vld [vmem:[%s3618_s0 + $0x330] sm:$0xff] }
  0x4e   :  { %v2022_v12 = vld [vmem:[%s3618_s0 + $0x450] sm:$0xff] }
  0x50   :  { %2286 = vmatmul.mubr.msk.f32.gmra.mrb[34].mxu0 %vm54_vm1, %v53_v13  ;;  %2348 = vmatmul.mubr.msk.f32.gmra.mrb[34].mxu1 %vm54_vm1, %v1881_v14  ;;  %v1950_v13 = vld [vmem:[%s3618_s0 + $0x338] sm:$0xff] }
  0x51   :  { %2358 = vmatprep.mubr.msk.f32.mxu0 %vm54_vm1, %v1919_v15  ;;  %2420 = vmatprep.mubr.msk.f32.mxu1 %vm54_vm1, %v1992_v16  ;;  %v2023_v14 = vld [vmem:[%s3618_s0 + $0x458] sm:$0xff]  ;;  %v1951_v15 = vld [vmem:[%s3618_s0 + $0x340] sm:$0xff] }
  0x52   :  { %v2024_v16 = vld [vmem:[%s3618_s0 + $0x460] sm:$0xff] }
  0x54   :  { %2359 = vmatmul.mubr.msk.f32.vlgmr.msra.gmra.mrb[36].mxu0 %vm54_vm1, %v1920_v17  ;;  %2421 = vmatmul.mubr.msk.f32.vlgmr.msra.gmra.mrb[36].mxu1 %vm54_vm1, %v1993_v18  ;;  %v1952_v17 = vld [vmem:[%s3618_s0 + $0x348] sm:$0xff] }
  0x55   :  { %2361 = vmatprep.mubr.msk.f32.mxu0 %vm54_vm1, %v1921_v19  ;;  %2423 = vmatprep.mubr.msk.f32.mxu1 %vm54_vm1, %v1994_v20  ;;  %v2025_v18 = vld [vmem:[%s3618_s0 + $0x468] sm:$0xff]  ;;  %v1953_v19 = vld [vmem:[%s3618_s0 + $0x350] sm:$0xff] }
  0x56   :  { %v2026_v20 = vld [vmem:[%s3618_s0 + $0x470] sm:$0xff] }
  0x58   :  { %2362 = vmatmul.mubr.msk.f32.gmra.mrb[38].mxu0 %vm54_vm1, %v1922_v21  ;;  %2424 = vmatmul.mubr.msk.f32.gmra.mrb[38].mxu1 %vm54_vm1, %v1995_v22  ;;  %v1954_v21 = vld [vmem:[%s3618_s0 + $0x358] sm:$0xff] }
  0x59   :  { %2364 = vmatprep.mubr.msk.f32.mxu0 %vm54_vm1, %v1923_v23  ;;  %2426 = vmatprep.mubr.msk.f32.mxu1 %vm54_vm1, %v1996_v24  ;;  %v2027_v22 = vld [vmem:[%s3618_s0 + $0x478] sm:$0xff] }
  0x5c   :  { %2365 = vmatmul.mubr.msk.f32.gmra.mrb[40].mxu0 %vm54_vm1, %v1924_v25  ;;  %2427 = vmatmul.mubr.msk.f32.gmra.mrb[40].mxu1 %vm54_vm1, %v1997_v26 }
  0x5d   :  { %2367 = vmatprep.mubr.msk.f32.mxu0 %vm54_vm1, %v1925_v27  ;;  %2429 = vmatprep.mubr.msk.f32.mxu1 %vm54_vm1, %v1998_v28 }
  0x60   :  { %2368 = vmatmul.mubr.msk.f32.gmra.mrb[42].mxu0 %vm54_vm1, %v1926_v29  ;;  %2430 = vmatmul.mubr.msk.f32.gmra.mrb[42].mxu1 %vm54_vm1, %v1999_v30 }
  0x61   :  { %2370 = vmatprep.mubr.msk.f32.mxu0 %vm54_vm1, %v1927_v31  ;;  %2432 = vmatprep.mubr.msk.f32.mxu1 %vm54_vm1, %v2000_v32 }
  0x64   :  { %2371 = vmatmul.mubr.msk.f32.gmra.mrb[44].mxu0 %vm54_vm1, %v1928_v33  ;;  %2433 = vmatmul.mubr.msk.f32.gmra.mrb[44].mxu1 %vm54_vm1, %v2001_v34 }
  0x65   :  { %2373 = vmatprep.mubr.msk.f32.mxu0 %vm54_vm1, %v1929_v35  ;;  %2435 = vmatprep.mubr.msk.f32.mxu1 %vm54_vm1, %v2002_v36 }
  0x68   :  { %2374 = vmatmul.mubr.msk.f32.gmra.mrb[46].mxu0 %vm54_vm1, %v1930_v37  ;;  %2436 = vmatmul.mubr.msk.f32.gmra.mrb[46].mxu1 %vm54_vm1, %v2003_v38 }
  0x69   :  { %2376 = vmatprep.mubr.msk.f32.mxu0 %vm54_vm1, %v1931_v39  ;;  %2438 = vmatprep.mubr.msk.f32.mxu1 %vm54_vm1, %v2004_v40 }
  0x6c   :  { %2377 = vmatmul.mubr.msk.f32.gmra.mrb[48].mxu0 %vm54_vm1, %v1932_v41  ;;  %2439 = vmatmul.mubr.msk.f32.gmra.mrb[48].mxu1 %vm54_vm1, %v2005_v42 }
  0x6d   :  { %2379 = vmatprep.mubr.msk.f32.mxu0 %vm54_vm1, %v1933_v43  ;;  %2441 = vmatprep.mubr.msk.f32.mxu1 %vm54_vm1, %v2006_v44 }
  0x70   :  { %2380 = vmatmul.mubr.msk.f32.gmra.mrb[50].mxu0 %vm54_vm1, %v1934_v45  ;;  %2442 = vmatmul.mubr.msk.f32.gmra.mrb[50].mxu1 %vm54_vm1, %v2007_v46 }
  0x71   :  { %2382 = vmatprep.mubr.msk.f32.mxu0 %vm54_vm1, %v1935_v47  ;;  %2444 = vmatprep.mubr.msk.f32.mxu1 %vm54_vm1, %v2008_v48 }
  0x74   :  { %2383 = vmatmul.mubr.msk.f32.gmra.mrb[52].mxu0 %vm54_vm1, %v1936_v49  ;;  %2445 = vmatmul.mubr.msk.f32.gmra.mrb[52].mxu1 %vm54_vm1, %v2009_v50 }
  0x75   :  { %2385 = vmatprep.mubr.msk.f32.mxu0 %vm54_vm1, %v1937_v51  ;;  %2447 = vmatprep.mubr.msk.f32.mxu1 %vm54_vm1, %v2010_v52 }
  0x78   :  { %2386 = vmatmul.mubr.msk.f32.gmra.mrb[54].mxu0 %vm54_vm1, %v1938_v53  ;;  %2448 = vmatmul.mubr.msk.f32.gmra.mrb[54].mxu1 %vm54_vm1, %v2011_v54 }
  0x79   :  { %2388 = vmatprep.mubr.msk.f32.mxu0 %vm54_vm1, %v1939_v55  ;;  %2450 = vmatprep.mubr.msk.f32.mxu1 %vm54_vm1, %v2012_v56 }
  0x7c   :  { %2389 = vmatmul.mubr.msk.f32.gmra.mrb[56].mxu0 %vm54_vm1, %v1940_v57  ;;  %2451 = vmatmul.mubr.msk.f32.gmra.mrb[56].mxu1 %vm54_vm1, %v2013_v58 }
  0x7d   :  { %2391 = vmatprep.mubr.msk.f32.mxu0 %vm54_vm1, %v1941_v59  ;;  %2453 = vmatprep.mubr.msk.f32.mxu1 %vm54_vm1, %v2014_v60 }
  0x80   :  { %2392 = vmatmul.mubr.msk.f32.gmra.mrb[58].mxu0 %vm54_vm1, %v1942_v61  ;;  %2454 = vmatmul.mubr.msk.f32.gmra.mrb[58].mxu1 %vm54_vm1, %v2015_v62 }
  0x81   :  { %2394 = vmatprep.mubr.msk.f32.mxu0 %vm54_vm1, %v1943_v63  ;;  %2456 = vmatprep.mubr.msk.f32.mxu1 %vm54_vm1, %v2016_v0 }
  0x84   :  { %2395 = vmatmul.mubr.msk.f32.gmra.mrb[60].mxu0 %vm54_vm1, %v1944_v1  ;;  %2457 = vmatmul.mubr.msk.f32.gmra.mrb[60].mxu1 %vm54_vm1, %v2017_v2 }
  0x85   :  { %2397 = vmatprep.mubr.msk.f32.mxu0 %vm54_vm1, %v1945_v3  ;;  %2459 = vmatprep.mubr.msk.f32.mxu1 %vm54_vm1, %v2018_v4 }
  0x88   :  { %2398 = vmatmul.mubr.msk.f32.gmra.mrb[62].mxu0 %vm54_vm1, %v1946_v5  ;;  %2460 = vmatmul.mubr.msk.f32.gmra.mrb[62].mxu1 %vm54_vm1, %v2019_v6 }
  0x89   :  { %2400 = vmatprep.mubr.msk.f32.mxu0 %vm54_vm1, %v1947_v7  ;;  %2462 = vmatprep.mubr.msk.f32.mxu1 %vm54_vm1, %v2020_v8 }
  0x8c   :  { %2401 = vmatmul.mubr.msk.f32.gmra.mrb[64].mxu0 %vm54_vm1, %v1948_v9  ;;  %2463 = vmatmul.mubr.msk.f32.gmra.mrb[64].mxu1 %vm54_vm1, %v2021_v10 }
  0x8d   :  { %2403 = vmatprep.mubr.msk.f32.mxu0 %vm54_vm1, %v1949_v11  ;;  %2465 = vmatprep.mubr.msk.f32.mxu1 %vm54_vm1, %v2022_v12 }
  0x90   :  { %2404 = vmatmul.mubr.msk.f32.gmra.mrb[66].mxu0 %vm54_vm1, %v1950_v13  ;;  %2466 = vmatmul.mubr.msk.f32.gmra.mrb[66].mxu1 %vm54_vm1, %v2023_v14 }
  0x91   :  { %2406 = vmatprep.mubr.msk.f32.mxu0 %vm54_vm1, %v1951_v15  ;;  %2468 = vmatprep.mubr.msk.f32.mxu1 %vm54_vm1, %v2024_v16  ;;  %v3363_v15 = vld [vmem:[%s3619_s2] ss:$0 sm:$0xff] }
  0x94   :  { %2407 = vmatmul.mubr.msk.f32.gmra.mrb[68].mxu0 %vm54_vm1, %v1952_v17  ;;  %2469 = vmatmul.mubr.msk.f32.gmra.mrb[68].mxu1 %vm54_vm1, %v2025_v18 }
  0x95   :  { %2409 = vmatprep.mubr.msk.f32.mxu0 %vm54_vm1, %v1953_v19  ;;  %2471 = vmatprep.mubr.msk.f32.mxu1 %vm54_vm1, %v2026_v20 }
  0x98   :  { %2410 = vmatmul.mubr.msk.f32.gmra.mrb[70].mxu0 %vm54_vm1, %v1954_v21  ;;  %2472 = vmatmul.mubr.msk.f32.gmra.mrb[70].mxu1 %vm54_vm1, %v2027_v22 }
  0xdf   :  { %v3144_v23 = vpop.f32.mrb[0].mxu0  ;;  %v3146_v24 = vpop.f32.mrb[0].mxu1 }
  0xe0   :  { %v3150_v26 = vpop.f32.mrb[1].mxu0  ;;  %v3152_v27 = vpop.f32.mrb[1].mxu1  ;;  %v3675_v18 = vmax.f32 %v3144_v23, %v3146_v24 }
  0xe3   :  { %v3156_v29 = vpop.f32.mrb[2].mxu0  ;;  %v3158_v30 = vpop.f32.mrb[2].mxu1 }
  0xe4   :  { %v3162_v32 = vpop.f32.mrb[3].mxu0  ;;  %v3164_v33 = vpop.f32.mrb[3].mxu1 }
  0xe7   :  { %v3168_v35 = vpop.f32.mrb[4].mxu0  ;;  %v3170_v36 = vpop.f32.mrb[4].mxu1 }
  0xe8   :  { %v3174_v38 = vpop.f32.mrb[5].mxu0  ;;  %v3176_v39 = vpop.f32.mrb[5].mxu1 }
  0xeb   :  { %v3180_v41 = vpop.f32.mrb[6].mxu0  ;;  %v3182_v42 = vpop.f32.mrb[6].mxu1 }
  0xec   :  { %v3186_v44 = vpop.f32.mrb[7].mxu0  ;;  %v3188_v45 = vpop.f32.mrb[7].mxu1 }
  0xef   :  { %v3192_v47 = vpop.f32.mrb[8].mxu0  ;;  %v3194_v48 = vpop.f32.mrb[8].mxu1 }
  0xf0   :  { %v3198_v50 = vpop.f32.mrb[9].mxu0  ;;  %v3200_v51 = vpop.f32.mrb[9].mxu1 }
  0xf3   :  { %v3204_v53 = vpop.f32.mrb[10].mxu0  ;;  %v3206_v54 = vpop.f32.mrb[10].mxu1 }
  0xf4   :  { %v3210_v56 = vpop.f32.mrb[11].mxu0  ;;  %v3212_v57 = vpop.f32.mrb[11].mxu1 }
  0xf7   :  { %v3216_v59 = vpop.f32.mrb[12].mxu0  ;;  %v3218_v60 = vpop.f32.mrb[12].mxu1 }
  0xf8   :  { %v3222_v62 = vpop.f32.mrb[13].mxu0  ;;  %v3224_v63 = vpop.f32.mrb[13].mxu1 }
  0xfb   :  { %v3228_v1 = vpop.f32.mrb[14].mxu0  ;;  %v3230_v2 = vpop.f32.mrb[14].mxu1 }
  0xfc   :  { %v3234_v4 = vpop.f32.mrb[15].mxu0  ;;  %v3236_v5 = vpop.f32.mrb[15].mxu1 }
  0xff   :  { %v3240_v7 = vpop.f32.mrb[16].mxu0  ;;  %v3242_v8 = vpop.f32.mrb[16].mxu1 }
 0x100   :  { %v3246_v10 = vpop.f32.mrb[17].mxu0  ;;  %v3248_v11 = vpop.f32.mrb[17].mxu1 }
 0x103   :  { %v3252_v13 = vpop.f32.mrb[18].mxu0  ;;  %v3254_v14 = vpop.f32.mrb[18].mxu1 }
 0x104   :  { %v3258_v16 = vpop.f32.mrb[19].mxu0  ;;  %v3260_v17 = vpop.f32.mrb[19].mxu1 }
 0x107   :  { %v3264_v19 = vpop.f32.mrb[20].mxu0  ;;  %v3266_v20 = vpop.f32.mrb[20].mxu1 }
 0x108   :  { %v3270_v22 = vpop.f32.mrb[21].mxu0  ;;  %v3272_v12 = vpop.f32.mrb[21].mxu1 }
 0x10b   :  { %v3276_v9 = vpop.f32.mrb[22].mxu0  ;;  %v3278_v6 = vpop.f32.mrb[22].mxu1 }
 0x10c   :  { %v3282_v3 = vpop.f32.mrb[23].mxu0  ;;  %v3284_v0 = vpop.f32.mrb[23].mxu1 }
 0x10d   :  { %3649 = vst [vmem:[#allocation2_spill] sm:$0xff] %v3282_v3  ;;  %3650 = vst [vmem:[#allocation3_spill] sm:$0xff] %v3284_v0 }
 0x10f   :  { %v3288_v61 = vpop.f32.mrb[24].mxu0  ;;  %v3290_v58 = vpop.f32.mrb[24].mxu1 }
 0x110   :  { %3651 = vst [vmem:[#allocation4_spill] sm:$0xff] %v3288_v61  ;;  %3652 = vst [vmem:[#allocation5_spill] sm:$0xff] %v3290_v58  ;;  %v3294_v55 = vpop.f32.mrb[25].mxu0  ;;  %v3296_v52 = vpop.f32.mrb[25].mxu1 }
 0x111   :  { %3653 = vst [vmem:[#allocation6_spill] sm:$0xff] %v3294_v55  ;;  %3654 = vst [vmem:[#allocation7_spill] sm:$0xff] %v3296_v52 }
 0x113   :  { %v3300_v49 = vpop.f32.mrb[26].mxu0  ;;  %v3302_v46 = vpop.f32.mrb[26].mxu1 }
 0x114   :  { %3655 = vst [vmem:[#allocation8_spill] sm:$0xff] %v3300_v49  ;;  %3656 = vst [vmem:[#allocation9_spill] sm:$0xff] %v3302_v46  ;;  %v3306_v43 = vpop.f32.mrb[27].mxu0  ;;  %v3308_v40 = vpop.f32.mrb[27].mxu1 }
 0x115   :  { %3657 = vst [vmem:[#allocation10_spill] sm:$0xff] %v3306_v43  ;;  %3658 = vst [vmem:[#allocation11_spill] sm:$0xff] %v3308_v40 }
 0x117   :  { %v3312_v37 = vpop.f32.mrb[28].mxu0  ;;  %v3314_v34 = vpop.f32.mrb[28].mxu1 }
 0x118   :  { %3659 = vst [vmem:[#allocation12_spill] sm:$0xff] %v3312_v37  ;;  %3660 = vst [vmem:[#allocation13_spill] sm:$0xff] %v3314_v34  ;;  %v3318_v31 = vpop.f32.mrb[29].mxu0  ;;  %v3320_v28 = vpop.f32.mrb[29].mxu1 }
 0x119   :  { %3661 = vst [vmem:[#allocation14_spill] sm:$0xff] %v3318_v31  ;;  %3662 = vst [vmem:[#allocation15_spill] sm:$0xff] %v3320_v28 }
 0x11b   :  { %v3324_v25 = vpop.f32.mrb[30].mxu0  ;;  %v3326_v46 = vpop.f32.mrb[30].mxu1 }
 0x11c   :  { %3663 = vst [vmem:[#allocation16_spill] sm:$0xff] %v3324_v25  ;;  %3664 = vst [vmem:[#allocation17_spill] sm:$0xff] %v3326_v46  ;;  %v3330_v40 = vpop.f32.mrb[31].mxu0  ;;  %v3332_v43 = vpop.f32.mrb[31].mxu1 }
 0x11d   :  { %3665 = vst [vmem:[#allocation18_spill] sm:$0xff] %v3330_v40  ;;  %3666 = vst [vmem:[#allocation19_spill] sm:$0xff] %v3332_v43 }
 0x11f   :  { %v3336_v34 = vpop.f32.mrb[32].mxu0  ;;  %v3338_v37 = vpop.f32.mrb[32].mxu1 }
 0x120   :  { %3667 = vst [vmem:[#allocation20_spill] sm:$0xff] %v3336_v34  ;;  %3668 = vst [vmem:[#allocation21_spill] sm:$0xff] %v3338_v37  ;;  %v3342_v28 = vpop.f32.mrb[33].mxu0  ;;  %v3344_v31 = vpop.f32.mrb[33].mxu1 }
 0x121   :  { %3669 = vst [vmem:[#allocation22_spill] sm:$0xff] %v3342_v28  ;;  %3670 = vst [vmem:[#allocation23_spill] sm:$0xff] %v3344_v31 }
 0x123   :  { %v3348_v46 = vpop.f32.mrb[34].mxu0  ;;  %v3350_v25 = vpop.f32.mrb[34].mxu1 }
 0x124   :  { %3671 = vst [vmem:[#allocation24_spill] sm:$0xff] %v3348_v46  ;;  %3672 = vst [vmem:[#allocation25_spill] sm:$0xff] %v3350_v25  ;;  %v3354_v43 = vpop.f32.mrb[35].mxu0  ;;  %v3356_v40 = vpop.f32.mrb[35].mxu1  ;;  %v3676_v46 = vmax.f32 %v3150_v26, %v3152_v27  ;;  %v3678_v26 = vmax.f32 %v3162_v32, %v3164_v33  ;;  %v3679_v33 = vmax.f32 %v3168_v35, %v3170_v36 }
 0x125   :  { %3673 = vst [vmem:[#allocation26_spill] sm:$0xff] %v3354_v43  ;;  %3674 = vst [vmem:[#allocation27_spill] sm:$0xff] %v3356_v40 }
 0x127   :  { %v2360_v37 = vpop.f32.mrb[36].mxu0  ;;  %v2422_v34 = vpop.f32.mrb[36].mxu1 }
 0x128   :  { %v1619_v49 = vmax.f32 %v2360_v37, %v2422_v34  ;;  %v1013_v52 = vpop.f32.mrb[37].mxu0  ;;  %v1403_v55 = vpop.f32.mrb[37].mxu1 }
 0x129   :  { %v1618_v31 = vmax.f32 %v1013_v52, %v1403_v55  ;;  %v3677_v52 = vmax.f32 %v3156_v29, %v3158_v30 }
 0x12a   :  { %v1655_v25 = vmax.f32 %v3675_v18, %v1619_v49 }
 0x12b   :  { %v1654_v28 = vmax.f32 %v3676_v46, %v1618_v31  ;;  %v2363_v21 = vpop.f32.mrb[38].mxu0  ;;  %v2425_v40 = vpop.f32.mrb[38].mxu1 }
 0x12c   :  { %v1698_v34 = vadd.f32 %v3363_v15, %v1655_v25  ;;  %v1621_v37 = vmax.f32 %v2363_v21, %v2425_v40  ;;  %v1023_v43 = vpop.f32.mrb[39].mxu0  ;;  %v1413_v58 = vpop.f32.mrb[39].mxu1 }
 0x12d   :  { %v1697_v61 = vadd.f32 %v3363_v15, %v1654_v28  ;;  %v1620_v0 = vmax.f32 %v1023_v43, %v1413_v58  ;;  %v3680_v58 = vmax.f32 %v3174_v38, %v3176_v39  ;;  %v3681_v39 = vmax.f32 %v3180_v41, %v3182_v42 }
 0x12e   :  { %v1734_v3 = vmax.f32 %v1698_v34, 0.0  ;;  %v1657_v23 = vmax.f32 %v3677_v52, %v1621_v37 }
 0x12f   :  { %v1733_v24 = vmax.f32 %v1697_v61, 0.0  ;;  %v1656_v27 = vmax.f32 %v3678_v26, %v1620_v0  ;;  %v2366_v31 = vpop.f32.mrb[40].mxu0  ;;  %v2428_v46 = vpop.f32.mrb[40].mxu1 }
 0x130   :  { %1770 = vst [vmem:[%s3620_s3 + $0x8] sm:$0xff] %v1734_v3  ;;  %v1700_v25 = vadd.f32 %v3363_v15, %v1657_v23  ;;  %v1623_v28 = vmax.f32 %v2366_v31, %v2428_v46  ;;  %v1033_v40 = vpop.f32.mrb[41].mxu0  ;;  %v1423_v43 = vpop.f32.mrb[41].mxu1 }
 0x131   :  { %1769 = vst [vmem:[%s3620_s3] sm:$0xff] %v1733_v24  ;;  %v1699_v29 = vadd.f32 %v3363_v15, %v1656_v27  ;;  %v1622_v30 = vmax.f32 %v1033_v40, %v1423_v43  ;;  %v3682_v24 = vmax.f32 %v3186_v44, %v3188_v45  ;;  %v3683_v45 = vmax.f32 %v3192_v47, %v3194_v48 }
 0x132   :  { %v1736_v32 = vmax.f32 %v1700_v25, 0.0  ;;  %v1659_v49 = vmax.f32 %v3679_v33, %v1623_v28 }
 0x133   :  { %v1735_v55 = vmax.f32 %v1699_v29, 0.0  ;;  %v1658_v61 = vmax.f32 %v3680_v58, %v1622_v30  ;;  %v2369_v0 = vpop.f32.mrb[42].mxu0  ;;  %v2431_v3 = vpop.f32.mrb[42].mxu1  ;;  %v3684_v30 = vmax.f32 %v3198_v50, %v3200_v51  ;;  %v3685_v51 = vmax.f32 %v3204_v53, %v3206_v54 }
 0x134   :  { %1772 = vst [vmem:[%s3620_s3 + $0x18] sm:$0xff] %v1736_v32  ;;  %v1702_v18 = vadd.f32 %v3363_v15, %v1659_v49  ;;  %v1625_v21 = vmax.f32 %v2369_v0, %v2431_v3  ;;  %v1043_v34 = vpop.f32.mrb[43].mxu0  ;;  %v1433_v37 = vpop.f32.mrb[43].mxu1 }
 0x135   :  { %1771 = vst [vmem:[%s3620_s3 + $0x10] sm:$0xff] %v1735_v55  ;;  %v1701_v35 = vadd.f32 %v3363_v15, %v1658_v61  ;;  %v1624_v36 = vmax.f32 %v1043_v34, %v1433_v37 }
 0x136   :  { %v1738_v38 = vmax.f32 %v1702_v18, 0.0  ;;  %v1661_v52 = vmax.f32 %v3681_v39, %v1625_v21  ;;  %v3686_v21 = vmax.f32 %v3210_v56, %v3212_v57  ;;  %v3687_v57 = vmax.f32 %v3216_v59, %v3218_v60 }
 0x137   :  { %v1737_v23 = vmax.f32 %v1701_v35, 0.0  ;;  %v1660_v26 = vmax.f32 %v3682_v24, %v1624_v36  ;;  %v2372_v27 = vpop.f32.mrb[44].mxu0  ;;  %v2434_v31 = vpop.f32.mrb[44].mxu1 }
 0x138   :  { %1774 = vst [vmem:[%s3620_s3 + $0x28] sm:$0xff] %v1738_v38  ;;  %v1704_v46 = vadd.f32 %v3363_v15, %v1661_v52  ;;  %v1627_v25 = vmax.f32 %v2372_v27, %v2434_v31  ;;  %v1053_v28 = vpop.f32.mrb[45].mxu0  ;;  %v1443_v40 = vpop.f32.mrb[45].mxu1 }
 0x139   :  { %1773 = vst [vmem:[%s3620_s3 + $0x20] sm:$0xff] %v1737_v23  ;;  %v1703_v41 = vadd.f32 %v3363_v15, %v1660_v26  ;;  %v1626_v42 = vmax.f32 %v1053_v28, %v1443_v40  ;;  %v3688_v26 = vmax.f32 %v3222_v62, %v3224_v63  ;;  %v3689_v63 = vmax.f32 %v3228_v1, %v3230_v2 }
 0x13a   :  { %v1740_v44 = vmax.f32 %v1704_v46, 0.0  ;;  %v1663_v43 = vmax.f32 %v3683_v45, %v1627_v25  ;;  %v3690_v45 = vmax.f32 %v3234_v4, %v3236_v5  ;;  %v3691_v5 = vmax.f32 %v3240_v7, %v3242_v8 }
 0x13b   :  { %v1739_v29 = vmax.f32 %v1703_v41, 0.0  ;;  %v1662_v32 = vmax.f32 %v3684_v30, %v1626_v42  ;;  %v2375_v33 = vpop.f32.mrb[46].mxu0  ;;  %v2437_v49 = vpop.f32.mrb[46].mxu1 }
 0x13c   :  { %1776 = vst [vmem:[%s3620_s3 + $0x38] sm:$0xff] %v1740_v44  ;;  %v1706_v55 = vadd.f32 %v3363_v15, %v1663_v43  ;;  %v1629_v58 = vmax.f32 %v2375_v33, %v2437_v49  ;;  %v1063_v61 = vpop.f32.mrb[47].mxu0  ;;  %v1453_v0 = vpop.f32.mrb[47].mxu1 }
 0x13d   :  { %1775 = vst [vmem:[%s3620_s3 + $0x30] sm:$0xff] %v1739_v29  ;;  %v1705_v47 = vadd.f32 %v3363_v15, %v1662_v32  ;;  %v1628_v48 = vmax.f32 %v1063_v61, %v1453_v0  ;;  %v3692_v0 = vmax.f32 %v3246_v10, %v3248_v11  ;;  %v3693_v11 = vmax.f32 %v3252_v13, %v3254_v14 }
 0x13e   :  { %v1742_v50 = vmax.f32 %v1706_v55, 0.0  ;;  %v1665_v3 = vmax.f32 %v3685_v51, %v1629_v58 }
 0x13f   :  { %v1741_v18 = vmax.f32 %v1705_v47, 0.0  ;;  %v1664_v34 = vmax.f32 %v3686_v21, %v1628_v48  ;;  %v2378_v37 = vpop.f32.mrb[48].mxu0  ;;  %v2440_v35 = vpop.f32.mrb[48].mxu1 }
 0x140   :  { %1778 = vst [vmem:[%s3620_s3 + $0x48] sm:$0xff] %v1742_v50  ;;  %v1708_v36 = vadd.f32 %v3363_v15, %v1665_v3  ;;  %v1631_v38 = vmax.f32 %v2378_v37, %v2440_v35  ;;  %v1073_v39 = vpop.f32.mrb[49].mxu0  ;;  %v1463_v52 = vpop.f32.mrb[49].mxu1  ;;  %v3694_v35 = vmax.f32 %v3258_v16, %v3260_v17  ;;  %v3695_v17 = vmax.f32 %v3264_v19, %v3266_v20 }
 0x141   :  { %1777 = vst [vmem:[%s3620_s3 + $0x40] sm:$0xff] %v1741_v18  ;;  %v1707_v53 = vadd.f32 %v3363_v15, %v1664_v34  ;;  %v1630_v54 = vmax.f32 %v1073_v39, %v1463_v52 }
 0x142   :  { %v1744_v56 = vmax.f32 %v1708_v36, 0.0  ;;  %v1667_v23 = vmax.f32 %v3687_v57, %v1631_v38 }
 0x143   :  { %v1743_v24 = vmax.f32 %v1707_v53, 0.0  ;;  %v1666_v27 = vmax.f32 %v3688_v26, %v1630_v54  ;;  %v2381_v31 = vpop.f32.mrb[50].mxu0  ;;  %v2443_v46 = vpop.f32.mrb[50].mxu1 }
 0x144   :  { %1780 = vst [vmem:[%s3620_s3 + $0x58] sm:$0xff] %v1744_v56  ;;  %v1710_v25 = vadd.f32 %v3363_v15, %v1667_v23  ;;  %v1633_v28 = vmax.f32 %v2381_v31, %v2443_v46  ;;  %v1083_v40 = vpop.f32.mrb[51].mxu0  ;;  %v1473_v41 = vpop.f32.mrb[51].mxu1 }
 0x145   :  { %1779 = vst [vmem:[%s3620_s3 + $0x50] sm:$0xff] %v1743_v24  ;;  %v1709_v59 = vadd.f32 %v3363_v15, %v1666_v27  ;;  %v1632_v60 = vmax.f32 %v1083_v40, %v1473_v41  ;;  %v3696_v24 = vmax.f32 %v3270_v22, %v3272_v12  ;;  %v3697_v22 = vmax.f32 %v3276_v9, %v3278_v6 }
 0x146   :  { %v1746_v62 = vmax.f32 %v1710_v25, 0.0  ;;  %v1669_v42 = vmax.f32 %v3689_v63, %v1633_v28 }
 0x147   :  { %v1745_v44 = vmax.f32 %v1709_v59, 0.0  ;;  %v1668_v43 = vmax.f32 %v3690_v45, %v1632_v60  ;;  %v2384_v29 = vpop.f32.mrb[52].mxu0  ;;  %v2446_v30 = vpop.f32.mrb[52].mxu1  ;;  %v3698_v60 = vld [vmem:[#allocation2_spill] sm:$0xff] }
 0x148   :  { %1782 = vst [vmem:[%s3620_s3 + $0x68] sm:$0xff] %v1746_v62  ;;  %v1712_v32 = vadd.f32 %v3363_v15, %v1669_v42  ;;  %v1635_v33 = vmax.f32 %v2384_v29, %v2446_v30  ;;  %v1093_v49 = vpop.f32.mrb[53].mxu0  ;;  %v1483_v55 = vpop.f32.mrb[53].mxu1  ;;  %v3699_v62 = vld [vmem:[#allocation3_spill] sm:$0xff] }
 0x149   :  { %1781 = vst [vmem:[%s3620_s3 + $0x60] sm:$0xff] %v1745_v44  ;;  %v1711_v1 = vadd.f32 %v3363_v15, %v1668_v43  ;;  %v1634_v2 = vmax.f32 %v1093_v49, %v1483_v55  ;;  %v3700_v63 = vmax.f32 %v3698_v60, %v3699_v62  ;;  %v3701_v49 = vld [vmem:[#allocation4_spill] sm:$0xff]  ;;  %v3702_v55 = vld [vmem:[#allocation5_spill] sm:$0xff] }
 0x14a   :  { %v1748_v4 = vmax.f32 %v1712_v32, 0.0  ;;  %v1671_v58 = vmax.f32 %v3691_v5, %v1635_v33  ;;  %v3704_v5 = vld [vmem:[#allocation6_spill] sm:$0xff] }
 0x14b   :  { %v1747_v61 = vmax.f32 %v1711_v1, 0.0  ;;  %v1670_v47 = vmax.f32 %v3692_v0, %v1634_v2  ;;  %v2387_v48 = vpop.f32.mrb[54].mxu0  ;;  %v2449_v50 = vpop.f32.mrb[54].mxu1  ;;  %v3703_v1 = vmax.f32 %v3701_v49, %v3702_v55 }
 0x14c   :  { %1784 = vst [vmem:[%s3620_s3 + $0x78] sm:$0xff] %v1748_v4  ;;  %v1714_v51 = vadd.f32 %v3363_v15, %v1671_v58  ;;  %v1637_v3 = vmax.f32 %v2387_v48, %v2449_v50  ;;  %v1103_v18 = vpop.f32.mrb[55].mxu0  ;;  %v1493_v21 = vpop.f32.mrb[55].mxu1  ;;  %v3705_v58 = vld [vmem:[#allocation7_spill] sm:$0xff] }
 0x14d   :  { %1783 = vst [vmem:[%s3620_s3 + $0x70] sm:$0xff] %v1747_v61  ;;  %v1713_v7 = vadd.f32 %v3363_v15, %v1670_v47  ;;  %v1636_v8 = vmax.f32 %v1103_v18, %v1493_v21  ;;  %v3706_v61 = vmax.f32 %v3704_v5, %v3705_v58 }
 0x14e   :  { %v1750_v10 = vmax.f32 %v1714_v51, 0.0  ;;  %v1673_v34 = vmax.f32 %v3693_v11, %v1637_v3  ;;  %v3708_v11 = vld [vmem:[#allocation9_spill] sm:$0xff] }
 0x14f   :  { %v1749_v37 = vmax.f32 %v1713_v7, 0.0  ;;  %v1672_v36 = vmax.f32 %v3694_v35, %v1636_v8  ;;  %v2390_v38 = vpop.f32.mrb[56].mxu0  ;;  %v2452_v39 = vpop.f32.mrb[56].mxu1 }
 0x150   :  { %1786 = vst [vmem:[%s3620_s3 + $0x88] sm:$0xff] %v1750_v10  ;;  %v1716_v52 = vadd.f32 %v3363_v15, %v1673_v34  ;;  %v1639_v53 = vmax.f32 %v2390_v38, %v2452_v39  ;;  %v1113_v54 = vpop.f32.mrb[57].mxu0  ;;  %v1503_v56 = vpop.f32.mrb[57].mxu1  ;;  %v3707_v10 = vld [vmem:[#allocation8_spill] sm:$0xff]  ;;  %v3711_v38 = vld [vmem:[#allocation11_spill] sm:$0xff] }
 0x151   :  { %1785 = vst [vmem:[%s3620_s3 + $0x80] sm:$0xff] %v1749_v37  ;;  %v1715_v13 = vadd.f32 %v3363_v15, %v1672_v36  ;;  %v1638_v14 = vmax.f32 %v1113_v54, %v1503_v56  ;;  %v3709_v34 = vmax.f32 %v3707_v10, %v3708_v11  ;;  %v3710_v36 = vld [vmem:[#allocation10_spill] sm:$0xff] }
 0x152   :  { %v1752_v16 = vmax.f32 %v1716_v52, 0.0  ;;  %v1675_v57 = vmax.f32 %v3695_v17, %v1639_v53  ;;  %v3712_v39 = vmax.f32 %v3710_v36, %v3711_v38 }
 0x153   :  { %v1751_v23 = vmax.f32 %v1715_v13, 0.0  ;;  %v1674_v26 = vmax.f32 %v3696_v24, %v1638_v14  ;;  %v2393_v27 = vpop.f32.mrb[58].mxu0  ;;  %v2455_v31 = vpop.f32.mrb[58].mxu1  ;;  %v3713_v24 = vld [vmem:[#allocation12_spill] sm:$0xff] }
 0x154   :  { %1788 = vst [vmem:[%s3620_s3 + $0x98] sm:$0xff] %v1752_v16  ;;  %v1718_v46 = vadd.f32 %v3363_v15, %v1675_v57  ;;  %v1641_v25 = vmax.f32 %v2393_v27, %v2455_v31  ;;  %v1123_v28 = vpop.f32.mrb[59].mxu0  ;;  %v1513_v40 = vpop.f32.mrb[59].mxu1 }
 0x155   :  { %1787 = vst [vmem:[%s3620_s3 + $0x90] sm:$0xff] %v1751_v23  ;;  %v1717_v19 = vadd.f32 %v3363_v15, %v1674_v26  ;;  %v1640_v20 = vmax.f32 %v1123_v28, %v1513_v40  ;;  %v3714_v26 = vld [vmem:[#allocation13_spill] sm:$0xff]  ;;  %v3717_v28 = vld [vmem:[#allocation15_spill] sm:$0xff] }
 0x156   :  { %v1754_v12 = vmax.f32 %v1718_v46, 0.0  ;;  %v1677_v41 = vmax.f32 %v3697_v22, %v1641_v25  ;;  %v3715_v27 = vmax.f32 %v3713_v24, %v3714_v26  ;;  %v3716_v25 = vld [vmem:[#allocation14_spill] sm:$0xff] }
 0x157   :  { %v1753_v59 = vmax.f32 %v1717_v19, 0.0  ;;  %v1676_v42 = vmax.f32 %v3700_v63, %v1640_v20  ;;  %v2396_v44 = vpop.f32.mrb[60].mxu0  ;;  %v2458_v45 = vpop.f32.mrb[60].mxu1  ;;  %v3718_v40 = vmax.f32 %v3716_v25, %v3717_v28 }
 0x158   :  { %1790 = vst [vmem:[%s3620_s3 + $0xa8] sm:$0xff] %v1754_v12  ;;  %v1720_v43 = vadd.f32 %v3363_v15, %v1677_v41  ;;  %v1643_v29 = vmax.f32 %v2396_v44, %v2458_v45  ;;  %v1133_v30 = vpop.f32.mrb[61].mxu0  ;;  %v1523_v32 = vpop.f32.mrb[61].mxu1  ;;  %v3719_v44 = vld [vmem:[#allocation16_spill] sm:$0xff]  ;;  %v3720_v45 = vld [vmem:[#allocation17_spill] sm:$0xff] }
 0x159   :  { %1789 = vst [vmem:[%s3620_s3 + $0xa0] sm:$0xff] %v1753_v59  ;;  %v1719_v6 = vadd.f32 %v3363_v15, %v1676_v42  ;;  %v1642_v9 = vmax.f32 %v1133_v30, %v1523_v32  ;;  %v3722_v32 = vld [vmem:[#allocation18_spill] sm:$0xff] }
 0x15a   :  { %v1756_v33 = vmax.f32 %v1720_v43, 0.0  ;;  %v1679_v2 = vmax.f32 %v3703_v1, %v1643_v29  ;;  %v3721_v43 = vmax.f32 %v3719_v44, %v3720_v45 }
 0x15b   :  { %v1755_v4 = vmax.f32 %v1719_v6, 0.0  ;;  %v1678_v0 = vmax.f32 %v3706_v61, %v1642_v9  ;;  %v2399_v47 = vpop.f32.mrb[62].mxu0  ;;  %v2461_v48 = vpop.f32.mrb[62].mxu1  ;;  %v3723_v6 = vld [vmem:[#allocation19_spill] sm:$0xff] }
 0x15c   :  { %1792 = vst [vmem:[%s3620_s3 + $0xb8] sm:$0xff] %v1756_v33  ;;  %v1722_v50 = vadd.f32 %v3363_v15, %v1679_v2  ;;  %v1645_v51 = vmax.f32 %v2399_v47, %v2461_v48  ;;  %v1143_v3 = vpop.f32.mrb[63].mxu0  ;;  %v1533_v18 = vpop.f32.mrb[63].mxu1  ;;  %v3724_v9 = vmax.f32 %v3722_v32, %v3723_v6  ;;  %v3725_v47 = vld [vmem:[#allocation20_spill] sm:$0xff]  ;;  %v3726_v48 = vld [vmem:[#allocation21_spill] sm:$0xff] }
 0x15d   :  { %1791 = vst [vmem:[%s3620_s3 + $0xb0] sm:$0xff] %v1755_v4  ;;  %v1721_v21 = vadd.f32 %v3363_v15, %v1678_v0  ;;  %v1644_v7 = vmax.f32 %v1143_v3, %v1533_v18  ;;  %v3728_v18 = vld [vmem:[#allocation22_spill] sm:$0xff] }
 0x15e   :  { %v1758_v8 = vmax.f32 %v1722_v50, 0.0  ;;  %v1681_v37 = vmax.f32 %v3709_v34, %v1645_v51  ;;  %v3727_v50 = vmax.f32 %v3725_v47, %v3726_v48 }
 0x15f   :  { %v1757_v35 = vmax.f32 %v1721_v21, 0.0  ;;  %v1680_v52 = vmax.f32 %v3712_v39, %v1644_v7  ;;  %v2402_v53 = vpop.f32.mrb[64].mxu0  ;;  %v2464_v54 = vpop.f32.mrb[64].mxu1  ;;  %v3729_v21 = vld [vmem:[#allocation23_spill] sm:$0xff] }
 0x160   :  { %1794 = vst [vmem:[%s3620_s3 + $0xc8] sm:$0xff] %v1758_v8  ;;  %v1724_v56 = vadd.f32 %v3363_v15, %v1681_v37  ;;  %v1647_v13 = vmax.f32 %v2402_v53, %v2464_v54  ;;  %v1153_v14 = vpop.f32.mrb[65].mxu0  ;;  %v1543_v16 = vpop.f32.mrb[65].mxu1  ;;  %v3730_v7 = vmax.f32 %v3728_v18, %v3729_v21  ;;  %v3731_v53 = vld [vmem:[#allocation24_spill] sm:$0xff]  ;;  %v3732_v54 = vld [vmem:[#allocation25_spill] sm:$0xff] }
 0x161   :  { %1793 = vst [vmem:[%s3620_s3 + $0xc0] sm:$0xff] %v1757_v35  ;;  %v1723_v17 = vadd.f32 %v3363_v15, %v1680_v52  ;;  %v1646_v57 = vmax.f32 %v1153_v14, %v1543_v16  ;;  %v3734_v16 = vld [vmem:[#allocation26_spill] sm:$0xff] }
 0x162   :  { %v1760_v23 = vmax.f32 %v1724_v56, 0.0  ;;  %v1683_v31 = vmax.f32 %v3715_v27, %v1647_v13  ;;  %v3733_v56 = vmax.f32 %v3731_v53, %v3732_v54 }
 0x163   :  { %v1759_v46 = vmax.f32 %v1723_v17, 0.0  ;;  %v1682_v19 = vmax.f32 %v3718_v40, %v1646_v57  ;;  %v2405_v20 = vpop.f32.mrb[66].mxu0  ;;  %v2467_v12 = vpop.f32.mrb[66].mxu1  ;;  %v3735_v17 = vld [vmem:[#allocation27_spill] sm:$0xff] }
 0x164   :  { %1796 = vst [vmem:[%s3620_s3 + $0xd8] sm:$0xff] %v1760_v23  ;;  %v1726_v22 = vadd.f32 %v3363_v15, %v1683_v31  ;;  %v1649_v41 = vmax.f32 %v2405_v20, %v2467_v12  ;;  %v1163_v59 = vpop.f32.mrb[67].mxu0  ;;  %v1553_v60 = vpop.f32.mrb[67].mxu1  ;;  %v3736_v57 = vmax.f32 %v3734_v16, %v3735_v17 }
 0x165   :  { %1795 = vst [vmem:[%s3620_s3 + $0xd0] sm:$0xff] %v1759_v46  ;;  %v1725_v62 = vadd.f32 %v3363_v15, %v1682_v19  ;;  %v1648_v63 = vmax.f32 %v1163_v59, %v1553_v60 }
 0x166   :  { %v1762_v42 = vmax.f32 %v1726_v22, 0.0  ;;  %v1685_v29 = vmax.f32 %v3721_v43, %v1649_v41 }
 0x167   :  { %v1761_v30 = vmax.f32 %v1725_v62, 0.0  ;;  %v1684_v33 = vmax.f32 %v3724_v9, %v1648_v63  ;;  %v2408_v49 = vpop.f32.mrb[68].mxu0  ;;  %v2470_v55 = vpop.f32.mrb[68].mxu1 }
 0x168   :  { %1798 = vst [vmem:[%s3620_s3 + $0xe8] sm:$0xff] %v1762_v42  ;;  %v1728_v1 = vadd.f32 %v3363_v15, %v1685_v29  ;;  %v1651_v2 = vmax.f32 %v2408_v49, %v2470_v55  ;;  %v1173_v4 = vpop.f32.mrb[69].mxu0  ;;  %v1563_v5 = vpop.f32.mrb[69].mxu1 }
 0x169   :  { %1797 = vst [vmem:[%s3620_s3 + $0xe0] sm:$0xff] %v1761_v30  ;;  %v1727_v58 = vadd.f32 %v3363_v15, %v1684_v33  ;;  %v1650_v61 = vmax.f32 %v1173_v4, %v1563_v5 }
 0x16a   :  { %v1764_v0 = vmax.f32 %v1728_v1, 0.0  ;;  %v1687_v51 = vmax.f32 %v3727_v50, %v1651_v2 }
 0x16b   :  { %v1763_v3 = vmax.f32 %v1727_v58, 0.0  ;;  %v1686_v8 = vmax.f32 %v3730_v7, %v1650_v61  ;;  %v2411_v10 = vpop.f32.mrb[70].mxu0  ;;  %v2473_v11 = vpop.f32.mrb[70].mxu1 }
 0x16c   :  { %1800 = vst [vmem:[%s3620_s3 + $0xf8] sm:$0xff] %v1764_v0  ;;  %v1730_v34 = vadd.f32 %v3363_v15, %v1687_v51  ;;  %v1653_v37 = vmax.f32 %v2411_v10, %v2473_v11  ;;  %v1183_v35 = vpop.f32.mrb[71].mxu0  ;;  %v1573_v36 = vpop.f32.mrb[71].mxu1 }
 0x16d   :  { %1799 = vst [vmem:[%s3620_s3 + $0xf0] sm:$0xff] %v1763_v3  ;;  %v1729_v38 = vadd.f32 %v3363_v15, %v1686_v8  ;;  %v1652_v39 = vmax.f32 %v1183_v35, %v1573_v36 }
 0x16e   :  { %v1766_v52 = vmax.f32 %v1730_v34, 0.0  ;;  %v1689_v13 = vmax.f32 %v3733_v56, %v1653_v37 }
 0x16f   :  { %v1765_v14 = vmax.f32 %v1729_v38, 0.0  ;;  %v1688_v23 = vmax.f32 %v3736_v57, %v1652_v39 }
 0x170   :  { %1802 = vst [vmem:[%s3620_s3 + $0x108] sm:$0xff] %v1766_v52  ;;  %v1732_v24 = vadd.f32 %v3363_v15, %v1689_v13 }
 0x171   :  { %1801 = vst [vmem:[%s3620_s3 + $0x100] sm:$0xff] %v1765_v14  ;;  %v1731_v26 = vadd.f32 %v3363_v15, %v1688_v23 }
 0x172   :  { %v1768_v27 = vmax.f32 %v1732_v24, 0.0 }
 0x173   :  { %v1767_v31 = vmax.f32 %v1731_v26, 0.0 }
 0x174   :  { %1804 = vst [vmem:[%s3620_s3 + $0x118] sm:$0xff] %v1768_v27 }
 0x175   :  { %1803 = vst [vmem:[%s3620_s3 + $0x110] sm:$0xff] %v1767_v31 }

// kernel: net_forward.4
= control target key start
LH: loop header
LB: loop body
LE: loop exit
PB: predicated region body
PF: predicated region fallthrough
CT: control target
= control target key end

     0   :  { %v651_v0 = vmov 0.0|0.0   ;;  %vm41_vm0 = vcmask 179200   ;;  %v652_v30 = vmov 0.0   ;;  %vm54_vm1 = vcmask 1045504   ;;  %s961_s1 = inlined_call_operand.vmem [shape: f32[150,128], index: 1, kind: input, shape index: {}]   ;;  %s962_s0 = inlined_call_operand.vmem [shape: f32[4,32,150], index: 0, kind: input, shape index: {}]   ;;  %s963_s2 = inlined_call_operand.vmem [shape: f32[1,128], index: 2, kind: input, shape index: {}]   ;;  %s964_s3 = inlined_call_operand.vmem [shape: f32[32,128], index: 3, kind: output, shape index: {}]  }
   0x1   :  { %541 = vmatprep.subr.bf16.mxu0 %v651_v0  ;;  %568 = vmatprep.subr.bf16.mxu1 %v651_v0  ;;  %v14_v1 = vld [vmem:[%s961_s1] sm:$0xff]  ;;  %v15_v2 = vld [vmem:[%s961_s1 + $0x8] sm:$0xff]  ;;  %v16_v3 = vld [vmem:[%s961_s1 + $0x10] sm:$0xff] }
   0x2   :  { %v684_v4 = vpack.c.bf16 %v15_v2, %v14_v1  ;;  %v17_v5 = vld [vmem:[%s961_s1 + $0x18] sm:$0xff]  ;;  %v18_v7 = vld [vmem:[%s961_s1 + $0x20] sm:$0xff]  ;;  %v19_v8 = vld [vmem:[%s961_s1 + $0x28] sm:$0xff] }
   0x3   :  { %v691_v6 = vpack.c.bf16 %v17_v5, %v16_v3  ;;  %v34_v9 = vld [vmem:[%s962_s0 + $0x8] sm:$0xff]  ;;  %v709_v11 = vpack.c.bf16 %v19_v8, %v18_v7  ;;  %v20_v12 = vld [vmem:[%s961_s1 + $0x30] sm:$0xff]  ;;  %v21_v13 = vld [vmem:[%s961_s1 + $0x38] sm:$0xff] }
   0x4   :  { %543 = vmatpush1.bf16.msra.mxu0 %v684_v4  ;;  %570 = vmatpush1.bf16.msra.mxu1 %v684_v4  ;;  %v502_v10 = vld [vmem:[%s962_s0 + $0x48] sm:$0xff]  ;;  %v723_v14 = vpack.c.bf16 %v21_v13, %v20_v12  ;;  %v22_v15 = vld [vmem:[%s961_s1 + $0x40] sm:$0xff]  ;;  %v24_v18 = vld [vmem:[%s961_s1 + $0x50] sm:$0xff] }
   0x5   :  { %544 = vmatprep.subr.bf16.mxu0 %v651_v0  ;;  %571 = vmatprep.subr.bf16.mxu1 %v651_v0  ;;  %v23_v16 = vld [vmem:[%s961_s1 + $0x48] sm:$0xff]  ;;  %v25_v19 = vld [vmem:[%s961_s1 + $0x58] sm:$0xff]  ;;  %v26_v21 = vld [vmem:[%s961_s1 + $0x60] sm:$0xff] }
   0x6   :  { %497 = vmatprep.mubr.msk.f32.mxu0 %vm41_vm0, %v34_v9  ;;  %510 = vmatprep.mubr.msk.f32.mxu1 %vm41_vm0, %v502_v10  ;;  %v735_v17 = vpack.c.bf16 %v23_v16, %v22_v15  ;;  %v747_v20 = vpack.c.bf16 %v25_v19, %v24_v18  ;;  %v27_v22 = vld [vmem:[%s961_s1 + $0x68] sm:$0xff]  ;;  %v28_v24 = vld [vmem:[%s961_s1 + $0x70] sm:$0xff]  ;;  %v29_v25 = vld [vmem:[%s961_s1 + $0x78] sm:$0xff] }
   0x7   :  { %v759_v23 = vpack.c.bf16 %v27_v22, %v26_v21  ;;  %v771_v26 = vpack.c.bf16 %v29_v25, %v28_v24  ;;  %v30_v27 = vld [vmem:[%s961_s1 + $0x80] sm:$0xff]  ;;  %v31_v28 = vld [vmem:[%s961_s1 + $0x88] sm:$0xff]  ;;  %v794_v31 = vld [vmem:[%s961_s1 + $0x90] sm:$0x3f] }
   0x8   :  { %546 = vmatpush1.bf16.msra.mxu0 %v691_v6  ;;  %573 = vmatpush1.bf16.msra.mxu1 %v691_v6  ;;  %v783_v29 = vpack.c.bf16 %v31_v28, %v30_v27  ;;  %v33_v32 = vld [vmem:[%s962_s0] sm:$0xff]  ;;  %v36_v34 = vld [vmem:[%s962_s0 + $0x18] sm:$0xff]  ;;  %v35_v36 = vld [vmem:[%s962_s0 + $0x10] sm:$0xff] }
   0x9   :  { %547 = vmatprep.subr.bf16.mxu0 %v651_v0  ;;  %574 = vmatprep.subr.bf16.mxu1 %v651_v0  ;;  %v501_v33 = vld [vmem:[%s962_s0 + $0x40] sm:$0xff]  ;;  %v504_v35 = vld [vmem:[%s962_s0 + $0x58] sm:$0xff]  ;;  %v503_v37 = vld [vmem:[%s962_s0 + $0x50] sm:$0xff] }
   0xa   :  { %v38_v38 = vld [vmem:[%s962_s0 + $0x28] sm:$0xff]  ;;  %v37_v40 = vld [vmem:[%s962_s0 + $0x20] sm:$0xff]  ;;  %v40_v42 = vld [vmem:[%s962_s0 + $0x38] sm:$0xff] }
   0xb   :  { %v506_v39 = vld [vmem:[%s962_s0 + $0x68] sm:$0xff]  ;;  %v505_v41 = vld [vmem:[%s962_s0 + $0x60] sm:$0xff]  ;;  %v508_v43 = vld [vmem:[%s962_s0 + $0x78] sm:$0xff] }
   0xc   :  { %549 = vmatpush1.bf16.msra.mxu0 %v709_v11  ;;  %576 = vmatpush1.bf16.msra.mxu1 %v709_v11  ;;  %v39_v44 = vld [vmem:[%s962_s0 + $0x30] sm:$0xff]  ;;  %v515_v46 = vld [vmem:[%s962_s0 + $0x88] sm:$0xff]  ;;  %v514_v48 = vld [vmem:[%s962_s0 + $0x80] sm:$0xff] }
   0xd   :  { %550 = vmatprep.subr.bf16.mxu0 %v651_v0  ;;  %577 = vmatprep.subr.bf16.mxu1 %v651_v0  ;;  %v507_v45 = vld [vmem:[%s962_s0 + $0x70] sm:$0xff]  ;;  %v528_v47 = vld [vmem:[%s962_s0 + $0xc8] sm:$0xff]  ;;  %v527_v49 = vld [vmem:[%s962_s0 + $0xc0] sm:$0xff] }
   0xe   :  { %v517_v50 = vld [vmem:[%s962_s0 + $0x98] sm:$0xff]  ;;  %v516_v52 = vld [vmem:[%s962_s0 + $0x90] sm:$0xff]  ;;  %v519_v54 = vld [vmem:[%s962_s0 + $0xa8] sm:$0xff] }
   0xf   :  { %v530_v51 = vld [vmem:[%s962_s0 + $0xd8] sm:$0xff]  ;;  %v529_v53 = vld [vmem:[%s962_s0 + $0xd0] sm:$0xff]  ;;  %v532_v55 = vld [vmem:[%s962_s0 + $0xe8] sm:$0xff] }
  0x10   :  { %552 = vmatpush1.bf16.msra.mxu0 %v723_v14  ;;  %579 = vmatpush1.bf16.msra.mxu1 %v723_v14  ;;  %v518_v56 = vld [vmem:[%s962_s0 + $0xa0] sm:$0xff]  ;;  %v521_v58 = vld [vmem:[%s962_s0 + $0xb8] sm:$0xff]  ;;  %v520_v60 = vld [vmem:[%s962_s0 + $0xb0] sm:$0xff] }
  0x11   :  { %553 = vmatprep.subr.bf16.mxu0 %v651_v0  ;;  %580 = vmatprep.subr.bf16.mxu1 %v651_v0  ;;  %v531_v57 = vld [vmem:[%s962_s0 + $0xe0] sm:$0xff]  ;;  %v534_v59 = vld [vmem:[%s962_s0 + $0xf8] sm:$0xff]  ;;  %v533_v61 = vld [vmem:[%s962_s0 + $0xf0] sm:$0xff] }
  0x14   :  { %555 = vmatpush1.bf16.msra.mxu0 %v735_v17  ;;  %582 = vmatpush1.bf16.msra.mxu1 %v735_v17 }
  0x15   :  { %556 = vmatprep.subr.bf16.mxu0 %v651_v0  ;;  %583 = vmatprep.subr.bf16.mxu1 %v651_v0 }
  0x18   :  { %558 = vmatpush1.bf16.msra.mxu0 %v747_v20  ;;  %585 = vmatpush1.bf16.msra.mxu1 %v747_v20 }
  0x19   :  { %559 = vmatprep.subr.bf16.mxu0 %v651_v0  ;;  %586 = vmatprep.subr.bf16.mxu1 %v651_v0 }
  0x1c   :  { %561 = vmatpush1.bf16.msra.mxu0 %v759_v23  ;;  %588 = vmatpush1.bf16.msra.mxu1 %v759_v23 }
  0x1d   :  { %562 = vmatprep.subr.bf16.mxu0 %v651_v0  ;;  %589 = vmatprep.subr.bf16.mxu1 %v651_v0 }
  0x20   :  { %564 = vmatpush1.bf16.msra.mxu0 %v771_v26  ;;  %591 = vmatpush1.bf16.msra.mxu1 %v771_v26 }
  0x21   :  { %565 = vmatprep.subr.bf16.mxu0 %v651_v0  ;;  %592 = vmatprep.subr.bf16.mxu1 %v651_v0 }
  0x24   :  { %567 = vmatpush1.bf16.msra.mxu0 %v783_v29  ;;  %594 = vmatpush1.bf16.msra.mxu1 %v783_v29 }
  0x25   :  { %94 = vmatprep.subr.mxu0 %v652_v30  ;;  %200 = vmatprep.subr.mxu1 %v652_v30 }
  0x28   :  { %496 = vmatpush1.msk.msra.mxu0 %vm54_vm1, %v794_v31  ;;  %509 = vmatpush1.msk.msra.mxu1 %vm54_vm1, %v794_v31 }
  0x29   :  { %123 = vmatmul.mubr.f32.vlgmr.msra.gmra.mrb[0].mxu0 %v33_v32  ;;  %229 = vmatmul.mubr.f32.vlgmr.msra.gmra.mrb[0].mxu1 %v501_v33 }
  0x2a   :  { %595 = vmatprep.subr.bf16.mxu0 %v651_v0  ;;  %622 = vmatprep.subr.bf16.mxu1 %v651_v0 }
  0x2b   :  { %597 = vmatpush1.bf16.msra.mxu0 %v684_v4  ;;  %624 = vmatpush1.bf16.msra.mxu1 %v684_v4 }
  0x2c   :  { %598 = vmatprep.subr.bf16.mxu0 %v651_v0  ;;  %625 = vmatprep.subr.bf16.mxu1 %v651_v0 }
  0x2d   :  { %498 = vmatprep.mubr.msk.f32.mxu0 %vm41_vm0, %v36_v34  ;;  %511 = vmatprep.mubr.msk.f32.mxu1 %vm41_vm0, %v504_v35 }
  0x2e   :  { %128 = vmatmul.mubr.f32.gmra.mrb[2].mxu0 %v35_v36  ;;  %234 = vmatmul.mubr.f32.gmra.mrb[2].mxu1 %v503_v37 }
  0x2f   :  { %600 = vmatpush1.bf16.msra.mxu0 %v691_v6  ;;  %627 = vmatpush1.bf16.msra.mxu1 %v691_v6 }
  0x30   :  { %601 = vmatprep.subr.bf16.mxu0 %v651_v0  ;;  %628 = vmatprep.subr.bf16.mxu1 %v651_v0 }
  0x31   :  { %499 = vmatprep.mubr.msk.f32.mxu0 %vm41_vm0, %v38_v38  ;;  %512 = vmatprep.mubr.msk.f32.mxu1 %vm41_vm0, %v506_v39 }
  0x32   :  { %133 = vmatmul.mubr.f32.gmra.mrb[4].mxu0 %v37_v40  ;;  %239 = vmatmul.mubr.f32.gmra.mrb[4].mxu1 %v505_v41 }
  0x33   :  { %603 = vmatpush1.bf16.msra.mxu0 %v709_v11  ;;  %630 = vmatpush1.bf16.msra.mxu1 %v709_v11 }
  0x34   :  { %604 = vmatprep.subr.bf16.mxu0 %v651_v0  ;;  %631 = vmatprep.subr.bf16.mxu1 %v651_v0 }
  0x35   :  { %500 = vmatprep.mubr.msk.f32.mxu0 %vm41_vm0, %v40_v42  ;;  %513 = vmatprep.mubr.msk.f32.mxu1 %vm41_vm0, %v508_v43 }
  0x36   :  { %138 = vmatmul.mubr.f32.gmra.mrb[6].mxu0 %v39_v44  ;;  %244 = vmatmul.mubr.f32.gmra.mrb[6].mxu1 %v507_v45 }
  0x37   :  { %606 = vmatpush1.bf16.msra.mxu0 %v723_v14  ;;  %633 = vmatpush1.bf16.msra.mxu1 %v723_v14 }
  0x38   :  { %607 = vmatprep.subr.bf16.mxu0 %v651_v0  ;;  %634 = vmatprep.subr.bf16.mxu1 %v651_v0 }
  0x39   :  { %523 = vmatprep.mubr.msk.f32.mxu0 %vm41_vm0, %v515_v46  ;;  %536 = vmatprep.mubr.msk.f32.mxu1 %vm41_vm0, %v528_v47 }
  0x3b   :  { %609 = vmatpush1.bf16.msra.mxu0 %v735_v17  ;;  %636 = vmatpush1.bf16.msra.mxu1 %v735_v17 }
  0x3c   :  { %610 = vmatprep.subr.bf16.mxu0 %v651_v0  ;;  %637 = vmatprep.subr.bf16.mxu1 %v651_v0 }
  0x3f   :  { %612 = vmatpush1.bf16.msra.mxu0 %v747_v20  ;;  %639 = vmatpush1.bf16.msra.mxu1 %v747_v20 }
  0x40   :  { %613 = vmatprep.subr.bf16.mxu0 %v651_v0  ;;  %640 = vmatprep.subr.bf16.mxu1 %v651_v0 }
  0x43   :  { %615 = vmatpush1.bf16.msra.mxu0 %v759_v23  ;;  %642 = vmatpush1.bf16.msra.mxu1 %v759_v23  ;;  %v540_v23 = vld [vmem:[%s963_s2] ss:$0 sm:$0xff] }
  0x44   :  { %616 = vmatprep.subr.bf16.mxu0 %v651_v0  ;;  %643 = vmatprep.subr.bf16.mxu1 %v651_v0 }
  0x47   :  { %618 = vmatpush1.bf16.msra.mxu0 %v771_v26  ;;  %645 = vmatpush1.bf16.msra.mxu1 %v771_v26 }
  0x48   :  { %619 = vmatprep.subr.bf16.mxu0 %v651_v0  ;;  %646 = vmatprep.subr.bf16.mxu1 %v651_v0 }
  0x4b   :  { %621 = vmatpush1.bf16.msra.mxu0 %v783_v29  ;;  %648 = vmatpush1.bf16.msra.mxu1 %v783_v29 }
  0x4c   :  { %306 = vmatprep.subr.mxu0 %v652_v30  ;;  %412 = vmatprep.subr.mxu1 %v652_v30 }
  0x4f   :  { %522 = vmatpush1.msk.msra.mxu0 %vm54_vm1, %v794_v31  ;;  %535 = vmatpush1.msk.msra.mxu1 %vm54_vm1, %v794_v31 }
  0x50   :  { %335 = vmatmul.mubr.f32.vlgmr.msra.gmra.mrb[8].mxu0 %v514_v48  ;;  %441 = vmatmul.mubr.f32.vlgmr.msra.gmra.mrb[8].mxu1 %v527_v49 }
  0x51   :  { %524 = vmatprep.mubr.msk.f32.mxu0 %vm41_vm0, %v517_v50  ;;  %537 = vmatprep.mubr.msk.f32.mxu1 %vm41_vm0, %v530_v51 }
  0x54   :  { %340 = vmatmul.mubr.f32.gmra.mrb[10].mxu0 %v516_v52  ;;  %446 = vmatmul.mubr.f32.gmra.mrb[10].mxu1 %v529_v53 }
  0x55   :  { %525 = vmatprep.mubr.msk.f32.mxu0 %vm41_vm0, %v519_v54  ;;  %538 = vmatprep.mubr.msk.f32.mxu1 %vm41_vm0, %v532_v55 }
  0x58   :  { %345 = vmatmul.mubr.f32.gmra.mrb[12].mxu0 %v518_v56  ;;  %451 = vmatmul.mubr.f32.gmra.mrb[12].mxu1 %v531_v57 }
  0x59   :  { %526 = vmatprep.mubr.msk.f32.mxu0 %vm41_vm0, %v521_v58  ;;  %539 = vmatprep.mubr.msk.f32.mxu1 %vm41_vm0, %v534_v59 }
  0x5c   :  { %350 = vmatmul.mubr.f32.gmra.mrb[14].mxu0 %v520_v60  ;;  %456 = vmatmul.mubr.f32.gmra.mrb[14].mxu1 %v533_v61 }
  0xfc   :  { %v124_v62 = vpop.f32.mrb[0].mxu0  ;;  %v230_v63 = vpop.f32.mrb[0].mxu1 }
  0xfd   :  { %v461_v0 = vmax.f32 %v124_v62, %v230_v63  ;;  %v126_v1 = vpop.f32.mrb[1].mxu0  ;;  %v232_v2 = vpop.f32.mrb[1].mxu1 }
 0x101   :  { %v129_v3 = vpop.f32.mrb[2].mxu0  ;;  %v235_v4 = vpop.f32.mrb[2].mxu1 }
 0x102   :  { %v462_v5 = vmax.f32 %v129_v3, %v235_v4  ;;  %v131_v6 = vpop.f32.mrb[3].mxu0  ;;  %v237_v7 = vpop.f32.mrb[3].mxu1 }
 0x105   :  { %v134_v8 = vpop.f32.mrb[4].mxu0  ;;  %v240_v9 = vpop.f32.mrb[4].mxu1 }
 0x106   :  { %v463_v10 = vmax.f32 %v134_v8, %v240_v9  ;;  %v136_v11 = vpop.f32.mrb[5].mxu0  ;;  %v242_v12 = vpop.f32.mrb[5].mxu1 }
 0x109   :  { %v139_v13 = vpop.f32.mrb[6].mxu0  ;;  %v245_v14 = vpop.f32.mrb[6].mxu1 }
 0x10a   :  { %v464_v15 = vmax.f32 %v139_v13, %v245_v14  ;;  %v141_v16 = vpop.f32.mrb[7].mxu0  ;;  %v247_v17 = vpop.f32.mrb[7].mxu1 }
 0x123   :  { %v336_v18 = vpop.f32.mrb[8].mxu0  ;;  %v442_v19 = vpop.f32.mrb[8].mxu1 }
 0x124   :  { %v465_v20 = vmax.f32 %v336_v18, %v442_v19  ;;  %v338_v21 = vpop.f32.mrb[9].mxu0  ;;  %v444_v22 = vpop.f32.mrb[9].mxu1 }
 0x126   :  { %v469_v24 = vmax.f32 %v461_v0, %v465_v20 }
 0x127   :  { %v341_v25 = vpop.f32.mrb[10].mxu0  ;;  %v447_v26 = vpop.f32.mrb[10].mxu1 }
 0x128   :  { %v480_v27 = vadd.f32 %v540_v23, %v469_v24  ;;  %v466_v28 = vmax.f32 %v341_v25, %v447_v26  ;;  %v343_v29 = vpop.f32.mrb[11].mxu0  ;;  %v449_v30 = vpop.f32.mrb[11].mxu1 }
 0x12a   :  { %v484_v31 = vmax.f32 %v480_v27, 0.0  ;;  %v470_v32 = vmax.f32 %v462_v5, %v466_v28 }
 0x12b   :  { %v346_v33 = vpop.f32.mrb[12].mxu0  ;;  %v452_v34 = vpop.f32.mrb[12].mxu1 }
 0x12c   :  { %488 = vst [vmem:[%s964_s3] sm:$0xff] %v484_v31  ;;  %v481_v35 = vadd.f32 %v540_v23, %v470_v32  ;;  %v467_v36 = vmax.f32 %v346_v33, %v452_v34  ;;  %v348_v37 = vpop.f32.mrb[13].mxu0  ;;  %v454_v38 = vpop.f32.mrb[13].mxu1 }
 0x12e   :  { %v485_v39 = vmax.f32 %v481_v35, 0.0  ;;  %v471_v40 = vmax.f32 %v463_v10, %v467_v36 }
 0x12f   :  { %v351_v41 = vpop.f32.mrb[14].mxu0  ;;  %v457_v42 = vpop.f32.mrb[14].mxu1 }
 0x130   :  { %489 = vst [vmem:[%s964_s3 + $0x8] sm:$0xff] %v485_v39  ;;  %v482_v43 = vadd.f32 %v540_v23, %v471_v40  ;;  %v468_v44 = vmax.f32 %v351_v41, %v457_v42  ;;  %v353_v45 = vpop.f32.mrb[15].mxu0  ;;  %v459_v46 = vpop.f32.mrb[15].mxu1 }
 0x132   :  { %v486_v47 = vmax.f32 %v482_v43, 0.0  ;;  %v472_v48 = vmax.f32 %v464_v15, %v468_v44 }
 0x134   :  { %490 = vst [vmem:[%s964_s3 + $0x10] sm:$0xff] %v486_v47  ;;  %v483_v49 = vadd.f32 %v540_v23, %v472_v48 }
 0x136   :  { %v487_v50 = vmax.f32 %v483_v49, 0.0 }
 0x138   :  { %491 = vst [vmem:[%s964_s3 + $0x18] sm:$0xff] %v487_v50 }

// kernel: net_forward.5
= control target key start
LH: loop header
LB: loop body
LE: loop exit
PB: predicated region body
PF: predicated region fallthrough
CT: control target
= control target key end

     0   :  { %v569_v3 = vmov 0.0|0.0   ;;  %vm570_vm0 = vmmov 0   ;;  %s838_s1 = inlined_call_operand.vmem [shape: f32[256,128], index: 1, kind: input, shape index: {}]   ;;  %s839_s0 = inlined_call_operand.vmem [shape: f32[8,256], index: 0, kind: input, shape index: {}]   ;;  %s840_s3 = inlined_call_operand.vmem [shape: f32[128,128], index: 3, kind: input, shape index: {}]   ;;  %s841_s5 = inlined_call_operand.vmem [shape: f32[128,128], index: 5, kind: input, shape index: {}]   ;;  %s842_s2 = inlined_call_operand.vmem [shape: f32[1,128], index: 2, kind: input, shape index: {}]   ;;  %s843_s4 = inlined_call_operand.vmem [shape: f32[1,128], index: 4, kind: input, shape index: {}]   ;;  %s844_s6 = inlined_call_operand.vmem [shape: f32[1,128], index: 6, kind: input, shape index: {}]   ;;  %s845_s7 = inlined_call_operand.vmem [shape: f32[8,128], index: 7, kind: output, shape index: {}]  }
   0x1   :  { %v44_v0 = vld [vmem:[%s838_s1 + $0x80] sm:$0xff]  ;;  %v45_v1 = vld [vmem:[%s838_s1 + $0x88] sm:$0xff]  ;;  %514 = vmatprep.subr.bf16.mxu1 %v569_v3  ;;  %v46_v6 = vld [vmem:[%s838_s1 + $0x90] sm:$0xff] }
   0x2   :  { %v28_v2 = vld [vmem:[%s838_s1] sm:$0xff]  ;;  %v482_v4 = vpack.c.bf16 %v45_v1, %v44_v0  ;;  %v29_v5 = vld [vmem:[%s838_s1 + $0x8] sm:$0xff]  ;;  %v47_v7 = vld [vmem:[%s838_s1 + $0x98] sm:$0xff] }
   0x3   :  { %v484_v8 = vpack.c.bf16 %v29_v5, %v28_v2  ;;  %v486_v9 = vpack.c.bf16 %v47_v7, %v46_v6  ;;  %v30_v10 = vld [vmem:[%s838_s1 + $0x10] sm:$0xff]  ;;  %v31_v11 = vld [vmem:[%s838_s1 + $0x18] sm:$0xff]  ;;  %v48_v12 = vld [vmem:[%s838_s1 + $0xa0] sm:$0xff] }
   0x4   :  { %483 = vmatprep.subr.bf16.mxu0 %v482_v4  ;;  %v49_v13 = vld [vmem:[%s838_s1 + $0xa8] sm:$0xff]  ;;  %v488_v14 = vpack.c.bf16 %v31_v11, %v30_v10  ;;  %v32_v16 = vld [vmem:[%s838_s1 + $0x20] sm:$0xff]  ;;  %v50_v18 = vld [vmem:[%s838_s1 + $0xb0] sm:$0xff] }
   0x5   :  { %485 = vmatpush3.bf16.msra.mxu0 %v484_v8  ;;  %v490_v15 = vpack.c.bf16 %v49_v13, %v48_v12  ;;  %v33_v17 = vld [vmem:[%s838_s1 + $0x28] sm:$0xff]  ;;  %v51_v19 = vld [vmem:[%s838_s1 + $0xb8] sm:$0xff]  ;;  %v34_v22 = vld [vmem:[%s838_s1 + $0x30] sm:$0xff]  ;;  %v571_v12 = vmov 0.0  }
   0x6   :  { %487 = vmatprep.subr.bf16.mxu0 %v486_v9  ;;  %v492_v20 = vpack.c.bf16 %v33_v17, %v32_v16  ;;  %v494_v21 = vpack.c.bf16 %v51_v19, %v50_v18  ;;  %v35_v23 = vld [vmem:[%s838_s1 + $0x38] sm:$0xff]  ;;  %v52_v24 = vld [vmem:[%s838_s1 + $0xc0] sm:$0xff]  ;;  %v53_v25 = vld [vmem:[%s838_s1 + $0xc8] sm:$0xff]  ;;  %444 = vmatprep.mubr.msk.f32.mxu1 %vm570_vm0, %v571_v12 }
   0x7   :  { %v27_v26 = vld [vmem:[%s839_s0 + $0x8] sm:$0xff]  ;;  %v138_v27 = vld [vmem:[%s840_s3] sm:$0xff]  ;;  %v496_v29 = vpack.c.bf16 %v35_v23, %v34_v22  ;;  %v140_v31 = vld [vmem:[%s840_s3 + $0x10] sm:$0xff]  ;;  %v498_v33 = vpack.c.bf16 %v53_v25, %v52_v24 }
   0x8   :  { %131 = vmatprep.mubr.f32.mxu0 %v27_v26  ;;  %v139_v28 = vld [vmem:[%s840_s3 + $0x8] sm:$0xff]  ;;  %v141_v32 = vld [vmem:[%s840_s3 + $0x18] sm:$0xff]  ;;  %v36_v34 = vld [vmem:[%s838_s1 + $0x40] sm:$0xff] }
   0x9   :  { %489 = vmatpush3.bf16.msra.mxu0 %v488_v14  ;;  %v515_v30 = vpack.c.bf16 %v139_v28, %v138_v27  ;;  %v37_v35 = vld [vmem:[%s838_s1 + $0x48] sm:$0xff]  ;;  %v54_v36 = vld [vmem:[%s838_s1 + $0xd0] sm:$0xff]  ;;  %v55_v37 = vld [vmem:[%s838_s1 + $0xd8] sm:$0xff]  ;;  %v518_v38 = vpack.c.bf16 %v141_v32, %v140_v31 }
   0xa   :  { %491 = vmatprep.subr.bf16.mxu0 %v490_v15  ;;  %v142_v39 = vld [vmem:[%s840_s3 + $0x20] sm:$0xff]  ;;  %v143_v40 = vld [vmem:[%s840_s3 + $0x28] sm:$0xff]  ;;  %v500_v41 = vpack.c.bf16 %v37_v35, %v36_v34  ;;  %v502_v42 = vpack.c.bf16 %v55_v37, %v54_v36  ;;  %v38_v43 = vld [vmem:[%s838_s1 + $0x50] sm:$0xff] }
   0xb   :  { %516 = vmatpush3.bf16.msra.mxu1 %v515_v30  ;;  %v39_v44 = vld [vmem:[%s838_s1 + $0x58] sm:$0xff]  ;;  %v56_v45 = vld [vmem:[%s838_s1 + $0xe0] sm:$0xff]  ;;  %v57_v46 = vld [vmem:[%s838_s1 + $0xe8] sm:$0xff]  ;;  %v521_v47 = vpack.c.bf16 %v143_v40, %v142_v39 }
   0xc   :  { %517 = vmatprep.subr.bf16.mxu1 %v569_v3  ;;  %v144_v48 = vld [vmem:[%s840_s3 + $0x30] sm:$0xff]  ;;  %v145_v49 = vld [vmem:[%s840_s3 + $0x38] sm:$0xff]  ;;  %v504_v50 = vpack.c.bf16 %v39_v44, %v38_v43  ;;  %v506_v51 = vpack.c.bf16 %v57_v46, %v56_v45  ;;  %v40_v52 = vld [vmem:[%s838_s1 + $0x60] sm:$0xff] }
   0xd   :  { %493 = vmatpush3.bf16.msra.mxu0 %v492_v20  ;;  %v41_v53 = vld [vmem:[%s838_s1 + $0x68] sm:$0xff]  ;;  %v58_v54 = vld [vmem:[%s838_s1 + $0xf0] sm:$0xff]  ;;  %v59_v55 = vld [vmem:[%s838_s1 + $0xf8] sm:$0xff]  ;;  %v524_v56 = vpack.c.bf16 %v145_v49, %v144_v48 }
   0xe   :  { %495 = vmatprep.subr.bf16.mxu0 %v494_v21  ;;  %v146_v57 = vld [vmem:[%s840_s3 + $0x40] sm:$0xff]  ;;  %v147_v58 = vld [vmem:[%s840_s3 + $0x48] sm:$0xff]  ;;  %v508_v59 = vpack.c.bf16 %v41_v53, %v40_v52  ;;  %v510_v60 = vpack.c.bf16 %v59_v55, %v58_v54  ;;  %v42_v61 = vld [vmem:[%s838_s1 + $0x70] sm:$0xff] }
   0xf   :  { %519 = vmatpush3.bf16.msra.mxu1 %v518_v38  ;;  %v43_v62 = vld [vmem:[%s838_s1 + $0x78] sm:$0xff]  ;;  %v527_v63 = vpack.c.bf16 %v147_v58, %v146_v57  ;;  %v148_v0 = vld [vmem:[%s840_s3 + $0x50] sm:$0xff]  ;;  %v26_v5 = vld [vmem:[%s839_s0] sm:$0xff] }
  0x10   :  { %520 = vmatprep.subr.bf16.mxu1 %v569_v3  ;;  %v149_v1 = vld [vmem:[%s840_s3 + $0x58] sm:$0xff]  ;;  %v512_v2 = vpack.c.bf16 %v43_v62, %v42_v61  ;;  %v150_v6 = vld [vmem:[%s840_s3 + $0x60] sm:$0xff]  ;;  %v151_v7 = vld [vmem:[%s840_s3 + $0x68] sm:$0xff] }
  0x11   :  { %497 = vmatpush3.bf16.msra.mxu0 %v496_v29  ;;  %v530_v4 = vpack.c.bf16 %v149_v1, %v148_v0  ;;  %v533_v8 = vpack.c.bf16 %v151_v7, %v150_v6  ;;  %v152_v9 = vld [vmem:[%s840_s3 + $0x70] sm:$0xff]  ;;  %v153_v10 = vld [vmem:[%s840_s3 + $0x78] sm:$0xff]  ;;  %v232_v13 = vld [vmem:[%s841_s5] sm:$0xff] }
  0x12   :  { %499 = vmatprep.subr.bf16.mxu0 %v498_v33  ;;  %v536_v11 = vpack.c.bf16 %v153_v10, %v152_v9  ;;  %v233_v14 = vld [vmem:[%s841_s5 + $0x8] sm:$0xff]  ;;  %v234_v15 = vld [vmem:[%s841_s5 + $0x10] sm:$0xff]  ;;  %v235_v17 = vld [vmem:[%s841_s5 + $0x18] sm:$0xff] }
  0x13   :  { %522 = vmatpush3.bf16.msra.mxu1 %v521_v47  ;;  %v539_v16 = vpack.c.bf16 %v233_v14, %v232_v13  ;;  %v542_v18 = vpack.c.bf16 %v235_v17, %v234_v15  ;;  %v236_v19 = vld [vmem:[%s841_s5 + $0x20] sm:$0xff]  ;;  %v237_v20 = vld [vmem:[%s841_s5 + $0x28] sm:$0xff]  ;;  %v238_v22 = vld [vmem:[%s841_s5 + $0x30] sm:$0xff] }
  0x14   :  { %523 = vmatprep.subr.bf16.mxu1 %v569_v3  ;;  %v545_v21 = vpack.c.bf16 %v237_v20, %v236_v19  ;;  %v239_v23 = vld [vmem:[%s841_s5 + $0x38] sm:$0xff]  ;;  %v240_v25 = vld [vmem:[%s841_s5 + $0x40] sm:$0xff]  ;;  %v241_v26 = vld [vmem:[%s841_s5 + $0x48] sm:$0xff] }
  0x15   :  { %501 = vmatpush3.bf16.msra.mxu0 %v500_v41  ;;  %v548_v24 = vpack.c.bf16 %v239_v23, %v238_v22  ;;  %v551_v27 = vpack.c.bf16 %v241_v26, %v240_v25  ;;  %v242_v28 = vld [vmem:[%s841_s5 + $0x50] sm:$0xff]  ;;  %v243_v29 = vld [vmem:[%s841_s5 + $0x58] sm:$0xff]  ;;  %v244_v31 = vld [vmem:[%s841_s5 + $0x60] sm:$0xff] }
  0x16   :  { %503 = vmatprep.subr.bf16.mxu0 %v502_v42  ;;  %v554_v30 = vpack.c.bf16 %v243_v29, %v242_v28  ;;  %v245_v32 = vld [vmem:[%s841_s5 + $0x68] sm:$0xff]  ;;  %v340_v35 = vld [vmem:[%s842_s2] ss:$0 sm:$0xff]  ;;  %v246_v40 = vld [vmem:[%s841_s5 + $0x70] sm:$0xff] }
  0x17   :  { %525 = vmatpush3.bf16.msra.mxu1 %v524_v56  ;;  %v557_v33 = vpack.c.bf16 %v245_v32, %v244_v31  ;;  %v247_v41 = vld [vmem:[%s841_s5 + $0x78] sm:$0xff]  ;;  %v342_v47 = vld [vmem:[%s844_s6] ss:$0 sm:$0xff] }
  0x18   :  { %526 = vmatprep.subr.bf16.mxu1 %v569_v3  ;;  %v560_v42 = vpack.c.bf16 %v247_v41, %v246_v40 }
  0x19   :  { %505 = vmatpush3.bf16.msra.mxu0 %v504_v50 }
  0x1a   :  { %507 = vmatprep.subr.bf16.mxu0 %v506_v51 }
  0x1b   :  { %528 = vmatpush3.bf16.msra.mxu1 %v527_v63 }
  0x1c   :  { %529 = vmatprep.subr.bf16.mxu1 %v569_v3 }
  0x1d   :  { %509 = vmatpush3.bf16.msra.mxu0 %v508_v59 }
  0x1e   :  { %511 = vmatprep.subr.bf16.mxu0 %v510_v60 }
  0x1f   :  { %531 = vmatpush3.bf16.msra.mxu1 %v530_v4 }
  0x20   :  { %532 = vmatprep.subr.bf16.mxu1 %v569_v3 }
  0x21   :  { %513 = vmatpush3.bf16.msra.mxu0 %v512_v2 }
  0x22   :  { %538 = vmatprep.subr.bf16.mxu0 %v569_v3 }
  0x23   :  { %534 = vmatpush3.bf16.msra.mxu1 %v533_v8 }
  0x24   :  { %132 = vmatmul.mubr.f32.vlgmr.msra.gmra.mrb[0].mxu0 %v26_v5  ;;  %535 = vmatprep.subr.bf16.mxu1 %v569_v3 }
  0x25   :  { %479 = vmatprep.mubr.msk.f32.mxu0 %vm570_vm0, %v571_v12  ;;  %540 = vmatpush3.bf16.msra.mxu0 %v539_v16 }
  0x26   :  { %541 = vmatprep.subr.bf16.mxu0 %v569_v3 }
  0x27   :  { %537 = vmatpush3.bf16.msra.mxu1 %v536_v11 }
  0x29   :  { %543 = vmatpush3.bf16.msra.mxu0 %v542_v18 }
  0x2a   :  { %544 = vmatprep.subr.bf16.mxu0 %v569_v3 }
  0x2d   :  { %546 = vmatpush3.bf16.msra.mxu0 %v545_v21 }
  0x2e   :  { %547 = vmatprep.subr.bf16.mxu0 %v569_v3 }
  0x31   :  { %549 = vmatpush3.bf16.msra.mxu0 %v548_v24 }
  0x32   :  { %550 = vmatprep.subr.bf16.mxu0 %v569_v3 }
  0x35   :  { %552 = vmatpush3.bf16.msra.mxu0 %v551_v27 }
  0x36   :  { %553 = vmatprep.subr.bf16.mxu0 %v569_v3 }
  0x39   :  { %555 = vmatpush3.bf16.msra.mxu0 %v554_v30 }
  0x3a   :  { %556 = vmatprep.subr.bf16.mxu0 %v569_v3 }
  0x3d   :  { %558 = vmatpush3.bf16.msra.mxu0 %v557_v33 }
  0x3e   :  { %559 = vmatprep.subr.bf16.mxu0 %v569_v3  ;;  %v341_v3 = vld [vmem:[%s843_s4] ss:$0 sm:$0xff] }
  0x41   :  { %561 = vmatpush3.bf16.msra.mxu0 %v560_v42 }
  0xf7   :  { %v375_v34 = vpop.f32.mrb[0].mxu0 }
  0xf8   :  { %v376_v36 = vpop.f32.mrb[1].mxu0 }
  0xf9   :  { %v377_v37 = vadd.f32 %v376_v36, %v375_v34 }
  0xfb   :  { %v134_v38 = vadd.f32 %v377_v37, %v340_v35 }
  0xfd   :  { %v137_v39 = vmax.f32 %v134_v38, 0.0 }
  0xff   :  { %445 = vmatmul.mubr.f32.vlgmr.msra.gmra.mrb[0].mxu1 %v137_v39 }
 0x1d2   :  { %v227_v43 = vpop.f32.mrb[0].mxu1 }
 0x1d3   :  { %v228_v44 = vadd.f32 %v341_v3, %v227_v43  ;;  %v446_v45 = vpop.f32.mrb[1].mxu1 }
 0x1d5   :  { %v231_v46 = vmax.f32 %v228_v44, 0.0 }
 0x1d7   :  { %480 = vmatmul.mubr.f32.vlgmr.msra.gmra.mrb[2].mxu0 %v231_v46 }
 0x2aa   :  { %v321_v48 = vpop.f32.mrb[2].mxu0 }
 0x2ab   :  { %v322_v49 = vadd.f32 %v342_v47, %v321_v48  ;;  %v481_v50 = vpop.f32.mrb[3].mxu0 }
 0x2ad   :  { %325 = vmax.xlane.f32.xlu0 %v322_v49 }
 0x33a   :  { %v326_v51 = vpop.xlane.xlu0 %325 }
 0x33b   :  { %v327_v52 = vsub.f32 %v322_v49, %v326_v51 }
 0x33d   :  { %v328_v53 = vmul.f32 1.442695, %v327_v52 }
 0x33f   :  { %565 = vpow2.f32 %v328_v53 }
 0x349   :  { %v566_v54 = vpop.eup %565 }
 0x34a   :  { %330 = vadd.xlane.f32.xlu0 %v566_v54 }
 0x3d7   :  { %v331_v55 = vpop.xlane.xlu0 %330 }
 0x3d8   :  { %567 = vlog2.f32 %v331_v55 }
 0x3e2   :  { %v568_v56 = vpop.eup %567 }
 0x3e3   :  { %v333_v57 = vmul.f32 0.6931472, %v568_v56 }
 0x3e5   :  { %v334_v58 = vsub.f32 %v327_v52, %v333_v57 }
 0x3e7   :  { %335 = vst [vmem:[%s845_s7] sm:$0xff] %v334_v58 }

</bundles_post_ra>
